<compile_context>
chip_gen: v5e
topology: v5e:2x2
jax: 0.10.0
libtpu: 0.0.40
codegen_flags: <defaults>
</compile_context>

<pallas_src>
import jax
import jax.numpy as jnp
from jax import lax
from jax.experimental import pallas as pl
from jax.experimental.pallas import tpu as pltpu


LANE = 128   # TPU lane width (last dim of vregs / MXU columns)
SUB = 8      # sublane granularity for the transposed output slab


def _round_up(x, m):
    return ((x + m - 1) // m) * m


# --------------------------------------------------------------------------
# Kernel
# --------------------------------------------------------------------------
def _mlp_kernel(x_ref, *refs):
    """refs = (w0, b0, w1, b1, ..., wL_T, bL_T, o_ref).

    x_ref      : (block_rows, in_dim)      f32 row tile
    w0         : (in_dim, width_p)         f32
    w1..wL-1   : (width_p, width_p)        bf16 (hidden)
    wL_T       : (out_pad8, width_p)       f32 (stored transposed)
    biases     : (1, width_p) f32 for hidden, (out_pad8, 1) f32 for the last
    o_ref      : (out_pad8, block_rows)    transposed output slab
    """
    o_ref = refs[-1]
    params = refs[:-1]
    n_layers = len(params) // 2

    h = x_ref[...].astype(jnp.float32)                  # cast-in-kernel (f32 feat)
    for i in range(n_layers - 1):
        w_ref = params[2 * i]
        b = params[2 * i + 1][...]                      # (1, width_p) f32
        lhs = h.astype(w_ref.dtype)                     # bf16 for hidden layers
        acc = jnp.dot(lhs, w_ref[...], preferred_element_type=jnp.float32) + b
        h = jnp.maximum(acc, 0.0)                       # ReLU, keep f32

    # Last layer, emitted transposed: out_t[o, r] = sum_k wT[o, k] * h[r, k].
    w_t = params[-2][...]                               # (out_pad8, width_p) f32
    b_t = params[-1][...]                               # (out_pad8, 1) f32
    acc_t = lax.dot_general(w_t, h, (((1,), (1,)), ((), ())),
                            preferred_element_type=jnp.float32) + b_t
    o_ref[...] = acc_t.astype(o_ref.dtype)              # out_actvn = Identity


# --------------------------------------------------------------------------
# Parameter preparation
# --------------------------------------------------------------------------
def prepare_mlp_params(weights, biases, *, hidden_dtype=jnp.bfloat16,
                       lane=LANE, out_sublane=SUB):
    """Pad hidden widths to multiples of 128 (lane-dense MXU), store the last
    layer's weight transposed and sublane-padded (out_pad8, width_p), keep
    first/last weights and all biases in f32, hidden weights in `hidden_dtype`.

    Zero padding is exact: padded hidden units see zero weights + zero bias
    -> ReLU(0) = 0; padded output rows are sliced off by the caller."""
    n_layers = len(weights)
    pw, pb = [], []
    prev = weights[0].shape[0]                          # in_dim stays unpadded
    for i, (w, b) in enumerate(zip(weights, biases)):
        fan_in, fan_out = w.shape
        first, last = (i == 0), (i == n_layers - 1)
        dtype = jnp.float32 if (first or last) else hidden_dtype
        if last:
            out_p = _round_up(fan_out, out_sublane)
            w_p = jnp.zeros((out_p, prev), dtype)
            w_p = w_p.at[:fan_out, :fan_in].set(w.T.astype(dtype))
            b_p = jnp.zeros((out_p, 1), jnp.float32)
            b_p = b_p.at[:fan_out, 0].set(b.astype(jnp.float32))
        else:
            out_p = _round_up(fan_out, lane)
            w_p = jnp.zeros((prev, out_p), dtype)
            w_p = w_p.at[:fan_in, :fan_out].set(w.astype(dtype))
            b_p = jnp.zeros((1, out_p), jnp.float32)
            b_p = b_p.at[0, :fan_out].set(b.astype(jnp.float32))
        pw.append(w_p)
        pb.append(b_p)
        prev = out_p
    return pw, pb


# --------------------------------------------------------------------------
# Generation-aware sizing helpers
# --------------------------------------------------------------------------
def _vmem_capacity_bytes():
    try:
        cap = getattr(pltpu.get_tpu_info(), "vmem_capacity_bytes", None)
        if cap:
            return int(cap)
    except Exception:
        pass
    return 64 << 20          # conservative fallback (v7x per-TC VMEM)


def _num_tensorcores(vmem_cap):
    try:
        kind = jax.devices()[0].device_kind.lower()
    except Exception:
        kind = ""
    if "v7" in kind:
        return 2
    # v7x has 64 MiB/TC; v5e/v6e have 128 MiB and a single TC.
    return 2 if vmem_cap <= (96 << 20) else 1


def _choose_block_rows(n, in_dim, out_sub, max_w, resident_param_bytes,
                       budget, num_tc, requested):
    sub = LANE   # keep the row tile a multiple of 128 (lane-dense output store)
    per_row = (2 * in_dim * 4          # input tile, double buffered, f32
               + 2 * out_sub * 4       # transposed output tile, double buffered
               + 3 * max_w * 4         # f32 activation / accumulator working set
               + max_w * 2)            # bf16 matmul-lhs copy
    fixed = resident_param_bytes + (6 << 20)   # params + Mosaic internal scratch
    avail = max(budget - fixed, per_row * sub)
    br = min(int(requested), int(avail // per_row))
    if num_tc > 1:
        # keep >= 2 grid steps per TensorCore when there is enough work (v7x)
        br = min(br, _round_up(pl.cdiv(n, 2 * num_tc), sub))
    else:
        # single-TC chips (v5e/v6e): grid is a serial loop -> biggest tile wins
        br = min(br, _round_up(n, sub))
    br = max(sub, (br // sub) * sub)
    return int(br)


# --------------------------------------------------------------------------
# pallas_call wrapper
# --------------------------------------------------------------------------
def _run_pallas(x2d, pw, pb, out_sub, out_dtype, n, in_dim, budget, num_tc,
                requested_rows, buffered_params):
    mult = 1 if buffered_params else 2
    param_bytes = sum(int(a.size) * a.dtype.itemsize for a in pw + pb)
    max_w = max(max(a.shape) for a in pw)
    br = _choose_block_rows(n, in_dim, out_sub, max_w, mult * param_bytes,
                            budget, num_tc, requested_rows)

    need = (2 * br * in_dim * 4
            + 2 * out_sub * br * 4
            + mult * param_bytes
            + 3 * br * max_w * 4 + br * max_w * 2
            + (4 << 20))
    vmem_limit = int(min(max(need, 32 << 20), budget))

    pkw = {"pipeline_mode": pl.Buffered(1)} if buffered_params else {}
    in_specs = [pl.BlockSpec((br, in_dim), lambda i: (i, 0))]
    args = [x2d]
    for w_p, b_p in zip(pw, pb):
        # Constant block index -> fetched once, VMEM-resident across all steps.
        in_specs.append(pl.BlockSpec(w_p.shape, lambda i: (0, 0), **pkw))
        in_specs.append(pl.BlockSpec(b_p.shape, lambda i: (0, 0), **pkw))
        args.append(w_p)
        args.append(b_p)

    return pl.pallas_call(
        _mlp_kernel,
        out_shape=jax.ShapeDtypeStruct((out_sub, n), out_dtype),
        grid_spec=pltpu.PrefetchScalarGridSpec(
            num_scalar_prefetch=0,
            grid=(pl.cdiv(n, br),),
            in_specs=in_specs,
            out_specs=pl.BlockSpec((out_sub, br), lambda i: (0, i)),
        ),
        compiler_params=pltpu.CompilerParams(
            dimension_semantics=("parallel",),
            vmem_limit_bytes=vmem_limit,
        ),
    )(*args)


def mlp_regressor_forward(feat, weights, biases, *, block_rows=2048,
                          hidden_dtype=jnp.bfloat16):
    """Run the MLP regressor on feat of shape (..., in_dim) -> (..., out_dim)."""
    in_dim = feat.shape[-1]
    out_dim = weights[-1].shape[-1]
    lead = feat.shape[:-1]

    pw, pb = prepare_mlp_params(weights, biases, hidden_dtype=hidden_dtype)
    out_sub = pw[-1].shape[0]                      # round_up(out_dim, 8)

    x2d = feat.reshape(-1, in_dim)                 # no cast, no pad (in-kernel cast)
    n = x2d.shape[0]

    vmem_cap = _vmem_capacity_bytes()
    budget = max(min(int(vmem_cap * 0.85), 110 << 20), 24 << 20)
    num_tc = _num_tensorcores(vmem_cap)

    try:
        out_t = _run_pallas(x2d, pw, pb, out_sub, feat.dtype, n, in_dim,
                            budget, num_tc, block_rows, buffered_params=True)
    except Exception:
        # Fallback if single-buffered (Buffered(1)) param specs are rejected.
        out_t = _run_pallas(x2d, pw, pb, out_sub, feat.dtype, n, in_dim,
                            budget, num_tc, block_rows, buffered_params=False)

    # Tiny (<= 8 x n) post-processing: drop padded output rows, un-transpose.
    out2d = out_t[:out_dim, :].T
    return out2d.reshape(*lead, out_dim)


# --------------------------------------------------------------------------
# Synthetic init + references
# --------------------------------------------------------------------------
def init_mlp_params(key, in_dim, out_dim, width, depth, dtype=jnp.float32):
    """Torch-Linear-style init + the special N(0, 1e-4) init of the final bias
    done by MlpRegressor."""
    dims = [in_dim] + [width] * depth + [out_dim]
    weights, biases = [], []
    layer_keys = jax.random.split(key, len(dims) - 1)
    for i, (fan_in, fan_out) in enumerate(zip(dims[:-1], dims[1:])):
        kw, kb = jax.random.split(layer_keys[i])
        bound = 1.0 / (fan_in ** 0.5)
        w = jax.random.uniform(kw, (fan_in, fan_out), dtype, -bound, bound)
        if i == len(dims) - 2:
            b = (1e-4 * jax.random.normal(kb, (fan_out,))).astype(dtype)
        else:
            b = jax.random.uniform(kb, (fan_out,), dtype, -bound, bound)
        weights.append(w)
        biases.append(b)
    return weights, biases


def _reference_forward_f32(feat, weights, biases):
    """Pure-f32 reference (matches the torch module's float semantics)."""
    h = feat.astype(jnp.float32).reshape(-1, feat.shape[-1])
    for i, (w, b) in enumerate(zip(weights, biases)):
        h = h @ w.astype(jnp.float32) + b.astype(jnp.float32)
        if i < len(weights) - 1:
            h = jnp.maximum(h, 0.0)
    return h.reshape(*feat.shape[:-1], weights[-1].shape[-1]).astype(feat.dtype)


def _reference_forward_mixed(feat, weights, biases, hidden_dtype):
    """Reference mirroring the kernel's per-layer precision (f32 first/last
    weights, bf16 hidden matmuls, f32 accumulation / bias / ReLU)."""
    h = feat.astype(jnp.float32).reshape(-1, feat.shape[-1])
    n_layers = len(weights)
    for i, (w, b) in enumerate(zip(weights, biases)):
        if i == n_layers - 1:
            h = jnp.dot(h, w.astype(jnp.float32),
                        preferred_element_type=jnp.float32) + b.astype(jnp.float32)
        else:
            dt = jnp.float32 if i == 0 else hidden_dtype
            acc = jnp.dot(h.astype(dt), w.astype(dt),
                          preferred_element_type=jnp.float32) + b.astype(jnp.float32)
            h = jnp.maximum(acc, 0.0)
    return h.reshape(*feat.shape[:-1], weights[-1].shape[-1]).astype(feat.dtype)


if __name__ == "__main__":
    # Small shapes consistent with the module: feat (..., in_dim) -> (..., out_dim)
    in_dim, out_dim, width, depth = 16, 3, 32, 4
    batch, seq = 2, 128   # 256 rows

    key = jax.random.PRNGKey(0)
    k_feat, k_params = jax.random.split(key)
    feat = jax.random.normal(k_feat, (batch, seq, in_dim), dtype=jnp.float32)
    weights, biases = init_mlp_params(k_params, in_dim, out_dim, width, depth)

    out = mlp_regressor_forward(feat, weights, biases)
    out = jax.block_until_ready(out)
    assert out.shape == (batch, seq, out_dim)

    # Check against an identical-precision reference (bf16 hidden matmuls, f32 accum).
    ref_mixed = _reference_forward_mixed(feat, weights, biases, jnp.bfloat16)
    assert jnp.allclose(out, ref_mixed, atol=2e-2, rtol=2e-2), \
        float(jnp.max(jnp.abs(out - ref_mixed)))

    # Loose check against the full-f32 torch-equivalent reference.
    ref_f32 = _reference_forward_f32(feat, weights, biases)
    assert jnp.allclose(out, ref_f32, atol=5e-2, rtol=5e-2), \
        float(jnp.max(jnp.abs(out - ref_f32)))

    print("KERNEL_OK")
</pallas_src>

<mosaic_0001>
module attributes {stable_mosaic.version = 11 : i64} {
  func.func @_mlp_kernel(%arg0: i32, %arg1: memref<128x16xf32, #tpu.memory_space<vmem>>, %arg2: memref<16x128xf32, #tpu.memory_space<vmem>>, %arg3: memref<1x128xf32, #tpu.memory_space<vmem>>, %arg4: memref<128x128xbf16, #tpu.memory_space<vmem>>, %arg5: memref<1x128xf32, #tpu.memory_space<vmem>>, %arg6: memref<128x128xbf16, #tpu.memory_space<vmem>>, %arg7: memref<1x128xf32, #tpu.memory_space<vmem>>, %arg8: memref<128x128xbf16, #tpu.memory_space<vmem>>, %arg9: memref<1x128xf32, #tpu.memory_space<vmem>>, %arg10: memref<8x128xf32, #tpu.memory_space<vmem>>, %arg11: memref<8x1xf32, #tpu.memory_space<vmem>>, %arg12: memref<8x128xf32, #tpu.memory_space<vmem>>) attributes {dimension_semantics = [#tpu.dimension_semantics<parallel>], iteration_bounds = array<i64: 2>, scalar_prefetch = 0 : i64, scratch_operands = 0 : i64, tpu.core_type = #tpu.core_type<tc>, window_params = [{transform_indices = @transform_0, window_bounds = array<i64: 128, 16>}, {pipeline_mode = #tpu.pipeline_mode<synchronous>, transform_indices = @transform_1, window_bounds = array<i64: 16, 128>}, {pipeline_mode = #tpu.pipeline_mode<synchronous>, transform_indices = @transform_2, window_bounds = array<i64: 1, 128>}, {pipeline_mode = #tpu.pipeline_mode<synchronous>, transform_indices = @transform_3, window_bounds = array<i64: 128, 128>}, {pipeline_mode = #tpu.pipeline_mode<synchronous>, transform_indices = @transform_4, window_bounds = array<i64: 1, 128>}, {pipeline_mode = #tpu.pipeline_mode<synchronous>, transform_indices = @transform_5, window_bounds = array<i64: 128, 128>}, {pipeline_mode = #tpu.pipeline_mode<synchronous>, transform_indices = @transform_6, window_bounds = array<i64: 1, 128>}, {pipeline_mode = #tpu.pipeline_mode<synchronous>, transform_indices = @transform_7, window_bounds = array<i64: 128, 128>}, {pipeline_mode = #tpu.pipeline_mode<synchronous>, transform_indices = @transform_8, window_bounds = array<i64: 1, 128>}, {pipeline_mode = #tpu.pipeline_mode<synchronous>, transform_indices = @transform_9, window_bounds = array<i64: 8, 128>}, {pipeline_mode = #tpu.pipeline_mode<synchronous>, transform_indices = @transform_10, window_bounds = array<i64: 8, 1>}, {transform_indices = @transform_11, window_bounds = array<i64: 8, 128>}]} {
    %c0 = arith.constant 0 : index
    %c0_0 = arith.constant 0 : index
    %0 = vector.load %arg1[%c0, %c0_0] : memref<128x16xf32, #tpu.memory_space<vmem>>, vector<128x16xf32>
    %c0_1 = arith.constant 0 : index
    %c0_2 = arith.constant 0 : index
    %1 = vector.load %arg3[%c0_1, %c0_2] : memref<1x128xf32, #tpu.memory_space<vmem>>, vector<1x128xf32>
    %c0_3 = arith.constant 0 : index
    %c0_4 = arith.constant 0 : index
    %2 = vector.load %arg2[%c0_3, %c0_4] : memref<16x128xf32, #tpu.memory_space<vmem>>, vector<16x128xf32>
    %cst = arith.constant dense<0.000000e+00> : vector<128x128xf32>
    %3 = tpu.matmul %0, %2, %cst {dimension_numbers = #tpu.dot_dimension_numbers<[1], [0], [0], [1], [0, 0, 1, 1], [], []>} : vector<128x16xf32>, vector<16x128xf32>, vector<128x128xf32> -> vector<128x128xf32>
    %4 = vector.broadcast %1 : vector<1x128xf32> to vector<128x128xf32>
    %5 = arith.addf %3, %4 : vector<128x128xf32>
    %cst_5 = arith.constant 0.000000e+00 : f32
    %6 = vector.broadcast %cst_5 : f32 to vector<128x128xf32>
    %7 = arith.maximumf %5, %6 : vector<128x128xf32>
    %c0_6 = arith.constant 0 : index
    %c0_7 = arith.constant 0 : index
    %8 = vector.load %arg5[%c0_6, %c0_7] : memref<1x128xf32, #tpu.memory_space<vmem>>, vector<1x128xf32>
    %9 = arith.truncf %7 : vector<128x128xf32> to vector<128x128xbf16>
    %c0_8 = arith.constant 0 : index
    %c0_9 = arith.constant 0 : index
    %10 = vector.load %arg4[%c0_8, %c0_9] : memref<128x128xbf16, #tpu.memory_space<vmem>>, vector<128x128xbf16>
    %cst_10 = arith.constant dense<0.000000e+00> : vector<128x128xf32>
    %11 = tpu.matmul %9, %10, %cst_10 {dimension_numbers = #tpu.dot_dimension_numbers<[1], [0], [0], [1], [0, 0, 1, 1], [], []>} : vector<128x128xbf16>, vector<128x128xbf16>, vector<128x128xf32> -> vector<128x128xf32>
    %12 = vector.broadcast %8 : vector<1x128xf32> to vector<128x128xf32>
    %13 = arith.addf %11, %12 : vector<128x128xf32>
    %cst_11 = arith.constant 0.000000e+00 : f32
    %14 = vector.broadcast %cst_11 : f32 to vector<128x128xf32>
    %15 = arith.maximumf %13, %14 : vector<128x128xf32>
    %c0_12 = arith.constant 0 : index
    %c0_13 = arith.constant 0 : index
    %16 = vector.load %arg7[%c0_12, %c0_13] : memref<1x128xf32, #tpu.memory_space<vmem>>, vector<1x128xf32>
    %17 = arith.truncf %15 : vector<128x128xf32> to vector<128x128xbf16>
    %c0_14 = arith.constant 0 : index
    %c0_15 = arith.constant 0 : index
    %18 = vector.load %arg6[%c0_14, %c0_15] : memref<128x128xbf16, #tpu.memory_space<vmem>>, vector<128x128xbf16>
    %cst_16 = arith.constant dense<0.000000e+00> : vector<128x128xf32>
    %19 = tpu.matmul %17, %18, %cst_16 {dimension_numbers = #tpu.dot_dimension_numbers<[1], [0], [0], [1], [0, 0, 1, 1], [], []>} : vector<128x128xbf16>, vector<128x128xbf16>, vector<128x128xf32> -> vector<128x128xf32>
    %20 = vector.broadcast %16 : vector<1x128xf32> to vector<128x128xf32>
    %21 = arith.addf %19, %20 : vector<128x128xf32>
    %cst_17 = arith.constant 0.000000e+00 : f32
    %22 = vector.broadcast %cst_17 : f32 to vector<128x128xf32>
    %23 = arith.maximumf %21, %22 : vector<128x128xf32>
    %c0_18 = arith.constant 0 : index
    %c0_19 = arith.constant 0 : index
    %24 = vector.load %arg9[%c0_18, %c0_19] : memref<1x128xf32, #tpu.memory_space<vmem>>, vector<1x128xf32>
    %25 = arith.truncf %23 : vector<128x128xf32> to vector<128x128xbf16>
    %c0_20 = arith.constant 0 : index
    %c0_21 = arith.constant 0 : index
    %26 = vector.load %arg8[%c0_20, %c0_21] : memref<128x128xbf16, #tpu.memory_space<vmem>>, vector<128x128xbf16>
    %cst_22 = arith.constant dense<0.000000e+00> : vector<128x128xf32>
    %27 = tpu.matmul %25, %26, %cst_22 {dimension_numbers = #tpu.dot_dimension_numbers<[1], [0], [0], [1], [0, 0, 1, 1], [], []>} : vector<128x128xbf16>, vector<128x128xbf16>, vector<128x128xf32> -> vector<128x128xf32>
    %28 = vector.broadcast %24 : vector<1x128xf32> to vector<128x128xf32>
    %29 = arith.addf %27, %28 : vector<128x128xf32>
    %cst_23 = arith.constant 0.000000e+00 : f32
    %30 = vector.broadcast %cst_23 : f32 to vector<128x128xf32>
    %31 = arith.maximumf %29, %30 : vector<128x128xf32>
    %c0_24 = arith.constant 0 : index
    %c0_25 = arith.constant 0 : index
    %32 = vector.load %arg10[%c0_24, %c0_25] : memref<8x128xf32, #tpu.memory_space<vmem>>, vector<8x128xf32>
    %c0_26 = arith.constant 0 : index
    %c0_27 = arith.constant 0 : index
    %33 = vector.load %arg11[%c0_26, %c0_27] : memref<8x1xf32, #tpu.memory_space<vmem>>, vector<8x1xf32>
    %cst_28 = arith.constant dense<0.000000e+00> : vector<8x128xf32>
    %34 = tpu.matmul %32, %31, %cst_28 {dimension_numbers = #tpu.dot_dimension_numbers<[1], [1], [0], [0], [0, 0, 1, 0], [], []>} : vector<8x128xf32>, vector<128x128xf32>, vector<8x128xf32> -> vector<8x128xf32>
    %35 = vector.broadcast %33 : vector<8x1xf32> to vector<8x128xf32>
    %36 = arith.addf %34, %35 : vector<8x128xf32>
    %c0_29 = arith.constant 0 : index
    %c0_30 = arith.constant 0 : index
    %37 = vector.load %arg12[%c0_29, %c0_30] : memref<8x128xf32, #tpu.memory_space<vmem>>, vector<8x128xf32>
    tpu.vector_store %arg12[%c0_29, %c0_30], %36 {strides = array<i32>} : memref<8x128xf32, #tpu.memory_space<vmem>>, vector<8x128xf32>,
    return
  }
  func.func @transform_0(%arg0: i32) -> (i32, i32) {
    %c0_i32 = arith.constant 0 : i32
    %c0_i32_0 = arith.constant 0 : i32
    return %arg0, %c0_i32 : i32, i32
  }
  func.func @transform_1(%arg0: i32) -> (i32, i32) {
    %c0_i32 = arith.constant 0 : i32
    %c0_i32_0 = arith.constant 0 : i32
    %c0_i32_1 = arith.constant 0 : i32
    return %c0_i32, %c0_i32_0 : i32, i32
  }
  func.func @transform_2(%arg0: i32) -> (i32, i32) {
    %c0_i32 = arith.constant 0 : i32
    %c0_i32_0 = arith.constant 0 : i32
    %c0_i32_1 = arith.constant 0 : i32
    return %c0_i32, %c0_i32_0 : i32, i32
  }
  func.func @transform_3(%arg0: i32) -> (i32, i32) {
    %c0_i32 = arith.constant 0 : i32
    %c0_i32_0 = arith.constant 0 : i32
    %c0_i32_1 = arith.constant 0 : i32
    return %c0_i32, %c0_i32_0 : i32, i32
  }
  func.func @transform_4(%arg0: i32) -> (i32, i32) {
    %c0_i32 = arith.constant 0 : i32
    %c0_i32_0 = arith.constant 0 : i32
    %c0_i32_1 = arith.constant 0 : i32
    return %c0_i32, %c0_i32_0 : i32, i32
  }
  func.func @transform_5(%arg0: i32) -> (i32, i32) {
    %c0_i32 = arith.constant 0 : i32
    %c0_i32_0 = arith.constant 0 : i32
    %c0_i32_1 = arith.constant 0 : i32
    return %c0_i32, %c0_i32_0 : i32, i32
  }
  func.func @transform_6(%arg0: i32) -> (i32, i32) {
    %c0_i32 = arith.constant 0 : i32
    %c0_i32_0 = arith.constant 0 : i32
    %c0_i32_1 = arith.constant 0 : i32
    return %c0_i32, %c0_i32_0 : i32, i32
  }
  func.func @transform_7(%arg0: i32) -> (i32, i32) {
    %c0_i32 = arith.constant 0 : i32
    %c0_i32_0 = arith.constant 0 : i32
    %c0_i32_1 = arith.constant 0 : i32
    return %c0_i32, %c0_i32_0 : i32, i32
  }
  func.func @transform_8(%arg0: i32) -> (i32, i32) {
    %c0_i32 = arith.constant 0 : i32
    %c0_i32_0 = arith.constant 0 : i32
    %c0_i32_1 = arith.constant 0 : i32
    return %c0_i32, %c0_i32_0 : i32, i32
  }
  func.func @transform_9(%arg0: i32) -> (i32, i32) {
    %c0_i32 = arith.constant 0 : i32
    %c0_i32_0 = arith.constant 0 : i32
    %c0_i32_1 = arith.constant 0 : i32
    return %c0_i32, %c0_i32_0 : i32, i32
  }
  func.func @transform_10(%arg0: i32) -> (i32, i32) {
    %c0_i32 = arith.constant 0 : i32
    %c0_i32_0 = arith.constant 0 : i32
    %c0_i32_1 = arith.constant 0 : i32
    return %c0_i32, %c0_i32_0 : i32, i32
  }
  func.func @transform_11(%arg0: i32) -> (i32, i32) {
    %c0_i32 = arith.constant 0 : i32
    %c0_i32_0 = arith.constant 0 : i32
    return %c0_i32, %arg0 : i32, i32
  }
}

module attributes {stable_mosaic.version = 11 : i64} {
  func.func @_mlp_kernel(%arg0: i32, %arg1: memref<128x16xf32, #tpu.memory_space<vmem>>, %arg2: memref<16x128xf32, #tpu.memory_space<vmem>>, %arg3: memref<1x128xf32, #tpu.memory_space<vmem>>, %arg4: memref<128x128xbf16, #tpu.memory_space<vmem>>, %arg5: memref<1x128xf32, #tpu.memory_space<vmem>>, %arg6: memref<128x128xbf16, #tpu.memory_space<vmem>>, %arg7: memref<1x128xf32, #tpu.memory_space<vmem>>, %arg8: memref<128x128xbf16, #tpu.memory_space<vmem>>, %arg9: memref<1x128xf32, #tpu.memory_space<vmem>>, %arg10: memref<8x128xf32, #tpu.memory_space<vmem>>, %arg11: memref<8x1xf32, #tpu.memory_space<vmem>>, %arg12: memref<8x128xf32, #tpu.memory_space<vmem>>) attributes {dimension_semantics = [#tpu.dimension_semantics<parallel>], iteration_bounds = array<i64: 2>, scalar_prefetch = 0 : i64, scratch_operands = 0 : i64, tpu.core_type = #tpu.core_type<tc>, window_params = [{transform_indices = @transform_0, window_bounds = array<i64: 128, 16>}, {pipeline_mode = #tpu.pipeline_mode<synchronous>, transform_indices = @transform_1, window_bounds = array<i64: 16, 128>}, {pipeline_mode = #tpu.pipeline_mode<synchronous>, transform_indices = @transform_2, window_bounds = array<i64: 1, 128>}, {pipeline_mode = #tpu.pipeline_mode<synchronous>, transform_indices = @transform_3, window_bounds = array<i64: 128, 128>}, {pipeline_mode = #tpu.pipeline_mode<synchronous>, transform_indices = @transform_4, window_bounds = array<i64: 1, 128>}, {pipeline_mode = #tpu.pipeline_mode<synchronous>, transform_indices = @transform_5, window_bounds = array<i64: 128, 128>}, {pipeline_mode = #tpu.pipeline_mode<synchronous>, transform_indices = @transform_6, window_bounds = array<i64: 1, 128>}, {pipeline_mode = #tpu.pipeline_mode<synchronous>, transform_indices = @transform_7, window_bounds = array<i64: 128, 128>}, {pipeline_mode = #tpu.pipeline_mode<synchronous>, transform_indices = @transform_8, window_bounds = array<i64: 1, 128>}, {pipeline_mode = #tpu.pipeline_mode<synchronous>, transform_indices = @transform_9, window_bounds = array<i64: 8, 128>}, {pipeline_mode = #tpu.pipeline_mode<synchronous>, transform_indices = @transform_10, window_bounds = array<i64: 8, 1>}, {transform_indices = @transform_11, window_bounds = array<i64: 8, 128>}]} {
    %c0 = arith.constant 0 : index
    %c0_0 = arith.constant 0 : index
    %0 = vector.load %arg1[%c0, %c0_0] : memref<128x16xf32, #tpu.memory_space<vmem>>, vector<128x16xf32>
    %c0_1 = arith.constant 0 : index
    %c0_2 = arith.constant 0 : index
    %1 = vector.load %arg3[%c0_1, %c0_2] : memref<1x128xf32, #tpu.memory_space<vmem>>, vector<1x128xf32>
    %c0_3 = arith.constant 0 : index
    %c0_4 = arith.constant 0 : index
    %2 = vector.load %arg2[%c0_3, %c0_4] : memref<16x128xf32, #tpu.memory_space<vmem>>, vector<16x128xf32>
    %cst = arith.constant dense<0.000000e+00> : vector<128x128xf32>
    %3 = tpu.matmul %0, %2, %cst {dimension_numbers = #tpu.dot_dimension_numbers<[1], [0], [0], [1], [0, 0, 1, 1], [], []>} : vector<128x16xf32>, vector<16x128xf32>, vector<128x128xf32> -> vector<128x128xf32>
    %4 = vector.broadcast %1 : vector<1x128xf32> to vector<128x128xf32>
    %5 = arith.addf %3, %4 : vector<128x128xf32>
    %cst_5 = arith.constant 0.000000e+00 : f32
    %6 = vector.broadcast %cst_5 : f32 to vector<128x128xf32>
    %7 = arith.maximumf %5, %6 : vector<128x128xf32>
    %c0_6 = arith.constant 0 : index
    %c0_7 = arith.constant 0 : index
    %8 = vector.load %arg5[%c0_6, %c0_7] : memref<1x128xf32, #tpu.memory_space<vmem>>, vector<1x128xf32>
    %9 = arith.truncf %7 : vector<128x128xf32> to vector<128x128xbf16>
    %c0_8 = arith.constant 0 : index
    %c0_9 = arith.constant 0 : index
    %10 = vector.load %arg4[%c0_8, %c0_9] : memref<128x128xbf16, #tpu.memory_space<vmem>>, vector<128x128xbf16>
    %cst_10 = arith.constant dense<0.000000e+00> : vector<128x128xf32>
    %11 = tpu.matmul %9, %10, %cst_10 {dimension_numbers = #tpu.dot_dimension_numbers<[1], [0], [0], [1], [0, 0, 1, 1], [], []>} : vector<128x128xbf16>, vector<128x128xbf16>, vector<128x128xf32> -> vector<128x128xf32>
    %12 = vector.broadcast %8 : vector<1x128xf32> to vector<128x128xf32>
    %13 = arith.addf %11, %12 : vector<128x128xf32>
    %cst_11 = arith.constant 0.000000e+00 : f32
    %14 = vector.broadcast %cst_11 : f32 to vector<128x128xf32>
    %15 = arith.maximumf %13, %14 : vector<128x128xf32>
    %c0_12 = arith.constant 0 : index
    %c0_13 = arith.constant 0 : index
    %16 = vector.load %arg7[%c0_12, %c0_13] : memref<1x128xf32, #tpu.memory_space<vmem>>, vector<1x128xf32>
    %17 = arith.truncf %15 : vector<128x128xf32> to vector<128x128xbf16>
    %c0_14 = arith.constant 0 : index
    %c0_15 = arith.constant 0 : index
    %18 = vector.load %arg6[%c0_14, %c0_15] : memref<128x128xbf16, #tpu.memory_space<vmem>>, vector<128x128xbf16>
    %cst_16 = arith.constant dense<0.000000e+00> : vector<128x128xf32>
    %19 = tpu.matmul %17, %18, %cst_16 {dimension_numbers = #tpu.dot_dimension_numbers<[1], [0], [0], [1], [0, 0, 1, 1], [], []>} : vector<128x128xbf16>, vector<128x128xbf16>, vector<128x128xf32> -> vector<128x128xf32>
    %20 = vector.broadcast %16 : vector<1x128xf32> to vector<128x128xf32>
    %21 = arith.addf %19, %20 : vector<128x128xf32>
    %cst_17 = arith.constant 0.000000e+00 : f32
    %22 = vector.broadcast %cst_17 : f32 to vector<128x128xf32>
    %23 = arith.maximumf %21, %22 : vector<128x128xf32>
    %c0_18 = arith.constant 0 : index
    %c0_19 = arith.constant 0 : index
    %24 = vector.load %arg9[%c0_18, %c0_19] : memref<1x128xf32, #tpu.memory_space<vmem>>, vector<1x128xf32>
    %25 = arith.truncf %23 : vector<128x128xf32> to vector<128x128xbf16>
    %c0_20 = arith.constant 0 : index
    %c0_21 = arith.constant 0 : index
    %26 = vector.load %arg8[%c0_20, %c0_21] : memref<128x128xbf16, #tpu.memory_space<vmem>>, vector<128x128xbf16>
    %cst_22 = arith.constant dense<0.000000e+00> : vector<128x128xf32>
    %27 = tpu.matmul %25, %26, %cst_22 {dimension_numbers = #tpu.dot_dimension_numbers<[1], [0], [0], [1], [0, 0, 1, 1], [], []>} : vector<128x128xbf16>, vector<128x128xbf16>, vector<128x128xf32> -> vector<128x128xf32>
    %28 = vector.broadcast %24 : vector<1x128xf32> to vector<128x128xf32>
    %29 = arith.addf %27, %28 : vector<128x128xf32>
    %cst_23 = arith.constant 0.000000e+00 : f32
    %30 = vector.broadcast %cst_23 : f32 to vector<128x128xf32>
    %31 = arith.maximumf %29, %30 : vector<128x128xf32>
    %c0_24 = arith.constant 0 : index
    %c0_25 = arith.constant 0 : index
    %32 = vector.load %arg10[%c0_24, %c0_25] : memref<8x128xf32, #tpu.memory_space<vmem>>, vector<8x128xf32>
    %c0_26 = arith.constant 0 : index
    %c0_27 = arith.constant 0 : index
    %33 = vector.load %arg11[%c0_26, %c0_27] : memref<8x1xf32, #tpu.memory_space<vmem>>, vector<8x1xf32>
    %cst_28 = arith.constant dense<0.000000e+00> : vector<8x128xf32>
    %34 = tpu.matmul %32, %31, %cst_28 {dimension_numbers = #tpu.dot_dimension_numbers<[1], [1], [0], [0], [0, 0, 1, 0], [], []>} : vector<8x128xf32>, vector<128x128xf32>, vector<8x128xf32> -> vector<8x128xf32>
    %35 = vector.broadcast %33 : vector<8x1xf32> to vector<8x128xf32>
    %36 = arith.addf %34, %35 : vector<8x128xf32>
    %c0_29 = arith.constant 0 : index
    %c0_30 = arith.constant 0 : index
    %37 = vector.load %arg12[%c0_29, %c0_30] : memref<8x128xf32, #tpu.memory_space<vmem>>, vector<8x128xf32>
    tpu.vector_store %arg12[%c0_29, %c0_30], %36 {strides = array<i32>} : memref<8x128xf32, #tpu.memory_space<vmem>>, vector<8x128xf32>,
    return
  }
  func.func @transform_0(%arg0: i32) -> (i32, i32) {
    %c0_i32 = arith.constant 0 : i32
    %c0_i32_0 = arith.constant 0 : i32
    return %arg0, %c0_i32 : i32, i32
  }
  func.func @transform_1(%arg0: i32) -> (i32, i32) {
    %c0_i32 = arith.constant 0 : i32
    %c0_i32_0 = arith.constant 0 : i32
    %c0_i32_1 = arith.constant 0 : i32
    return %c0_i32, %c0_i32_0 : i32, i32
  }
  func.func @transform_2(%arg0: i32) -> (i32, i32) {
    %c0_i32 = arith.constant 0 : i32
    %c0_i32_0 = arith.constant 0 : i32
    %c0_i32_1 = arith.constant 0 : i32
    return %c0_i32, %c0_i32_0 : i32, i32
  }
  func.func @transform_3(%arg0: i32) -> (i32, i32) {
    %c0_i32 = arith.constant 0 : i32
    %c0_i32_0 = arith.constant 0 : i32
    %c0_i32_1 = arith.constant 0 : i32
    return %c0_i32, %c0_i32_0 : i32, i32
  }
  func.func @transform_4(%arg0: i32) -> (i32, i32) {
    %c0_i32 = arith.constant 0 : i32
    %c0_i32_0 = arith.constant 0 : i32
    %c0_i32_1 = arith.constant 0 : i32
    return %c0_i32, %c0_i32_0 : i32, i32
  }
  func.func @transform_5(%arg0: i32) -> (i32, i32) {
    %c0_i32 = arith.constant 0 : i32
    %c0_i32_0 = arith.constant 0 : i32
    %c0_i32_1 = arith.constant 0 : i32
    return %c0_i32, %c0_i32_0 : i32, i32
  }
  func.func @transform_6(%arg0: i32) -> (i32, i32) {
    %c0_i32 = arith.constant 0 : i32
    %c0_i32_0 = arith.constant 0 : i32
    %c0_i32_1 = arith.constant 0 : i32
    return %c0_i32, %c0_i32_0 : i32, i32
  }
  func.func @transform_7(%arg0: i32) -> (i32, i32) {
    %c0_i32 = arith.constant 0 : i32
    %c0_i32_0 = arith.constant 0 : i32
    %c0_i32_1 = arith.constant 0 : i32
    return %c0_i32, %c0_i32_0 : i32, i32
  }
  func.func @transform_8(%arg0: i32) -> (i32, i32) {
    %c0_i32 = arith.constant 0 : i32
    %c0_i32_0 = arith.constant 0 : i32
    %c0_i32_1 = arith.constant 0 : i32
    return %c0_i32, %c0_i32_0 : i32, i32
  }
  func.func @transform_9(%arg0: i32) -> (i32, i32) {
    %c0_i32 = arith.constant 0 : i32
    %c0_i32_0 = arith.constant 0 : i32
    %c0_i32_1 = arith.constant 0 : i32
    return %c0_i32, %c0_i32_0 : i32, i32
  }
  func.func @transform_10(%arg0: i32) -> (i32, i32) {
    %c0_i32 = arith.constant 0 : i32
    %c0_i32_0 = arith.constant 0 : i32
    %c0_i32_1 = arith.constant 0 : i32
    return %c0_i32, %c0_i32_0 : i32, i32
  }
  func.func @transform_11(%arg0: i32) -> (i32, i32) {
    %c0_i32 = arith.constant 0 : i32
    %c0_i32_0 = arith.constant 0 : i32
    return %c0_i32, %arg0 : i32, i32
  }
}

</mosaic_0001>

<bundles_post_ra>
// kernel: tpu_custom_call.1
= control target key start
LH: loop header
LB: loop body
LE: loop exit
PB: predicated region body
PF: predicated region fallthrough
CT: control target
= control target key end

     0   :  { %s1635_s0 = inlined_call_operand.vmem [shape: f32[256,16], index: 0, kind: input, shape index: {}]   ;;  %s1636_s1 = inlined_call_operand.vmem [shape: f32[16,128], index: 1, kind: input, shape index: {}]   ;;  %s1637_s2 = inlined_call_operand.vmem [shape: f32[1,128], index: 2, kind: input, shape index: {}]   ;;  %s1638_s3 = inlined_call_operand.vmem [shape: bf16[128,128], index: 3, kind: input, shape index: {}]   ;;  %s1639_s4 = inlined_call_operand.vmem [shape: f32[1,128], index: 4, kind: input, shape index: {}]   ;;  %s1640_s5 = inlined_call_operand.vmem [shape: bf16[128,128], index: 5, kind: input, shape index: {}]   ;;  %s1641_s6 = inlined_call_operand.vmem [shape: f32[1,128], index: 6, kind: input, shape index: {}]   ;;  %s1642_s7 = inlined_call_operand.vmem [shape: bf16[128,128], index: 7, kind: input, shape index: {}]   ;;  %s1643_s8 = inlined_call_operand.vmem [shape: f32[1,128], index: 8, kind: input, shape index: {}]   ;;  %s1644_s9 = inlined_call_operand.vmem [shape: f32[8,128], index: 9, kind: input, shape index: {}]   ;;  %s1645_s10 = inlined_call_operand.vmem [shape: f32[8,1], index: 10, kind: input, shape index: {}]   ;;  %s1646_s11 = inlined_call_operand.hbm [shape: f32[8,256], index: 11, kind: output, shape index: {}]  }
   0x1   :  { %1647 = sst [smem:[#allocation5_spill]] %s1635_s0 }
   0x2   :  { %1648 = sst [smem:[#allocation6_spill]] %s1636_s1 }
   0x3   :  { %16 = vsyncpa [#allocation3], 0 }
   0x4   :  { %18 = vsyncpa [#allocation3 + $0x1], 0  ;;  %s1382_s17 = smov 0   ;;  %s1384_s18 = smov 0  }
   0x5   :  { %s1386_s19 = smov 0   ;;  %s1388_s20 = smov 0  }
   0x6 LB: > { %s1403_s21 = sadd.s32 4294967295, %s1319_s20   ;;  %s1065_s22 = sadd.s32 4294967294, %s1319_s20   ;;  %s1319_s20 = sphi %s1388_s20, %s1656_s20   ;;  %s1315_s19 = sphi %s1386_s19, %s1655_s19   ;;  %s1311_s18 = sphi %s1384_s18, %s1654_s18   ;;  %s1307_s17 = sphi %s1382_s17, %s1653_s17  }
   0x7   : > { %s1407_s23 = sadd.s32 1, %s1319_s20   ;;  %s267_s24 = sadd.s32 1, %s1315_s19 }
   0x8   : > { %s264_s25 = ssub.s32 %s1319_s20, %s1407_s23  ;;  %p277_p0 = scmp.ne.s32.totalorder %s1315_s19, %s1311_s18 }
   0x9   : > { %p265_p1 = scmp.eq.s32.totalorder %s264_s25, 0  ;;  %p278_p2 = scmp.eq.s32.totalorder %s1403_s21, 1 }
   0xa   : > { %p283_p3 = scmp.ne.s32.totalorder %s1311_s18, %s1307_s17  ;;  %p284_p4 = scmp.eq.s32.totalorder %s1065_s22, 1 }
   0xb   : > { %s1418_s26 = scalar_select %p265_p1, %s1315_s19, %s267_s24  }
   0xc   : > { %p1420_p5 = por %p278_p2, %p277_p0  ;;  %p1424_p6 = por %p284_p4, %p283_p3 }
   0xd   : > { %p1068_p7 = scmp.ge.s32.totalorder %s1319_s20, 1  ;;  %p341_p8 = scmp.lt.s32.totalorder %s1319_s20, 3 }
   0xf   : > { %p342_p9 = pnand %p1068_p7, %p341_p8 }
  0x10   : > { %s1651_s1 = sld [smem:[#allocation6_spill]] (!%p342_p9)  ;;  %s1070_s14 = sshll.u32 (!%p342_p9), %s1403_s21, 4 }
  0x11   : > { %345 = sbr.rel (%p342_p9) target bundleno = 902 (0x386), region = 64  ;;  %p382_p10 = scmp.lt.s32.totalorder (!%p342_p9), %s1070_s14, 31 }
  0x12   : > { %s1652_s0 = sld [smem:[#allocation5_spill]] (!%p342_p9)  ;;  %s378_s29 = sand.u32 (!%p342_p9), 1, %s1311_s18  }
  0x13   : > { %s1069_s30 = sshll.u32 (!%p342_p9), %s378_s29, 3  ;;  %s1185_s12 = sshll.u32 (!%p342_p9), %s1403_s21, 3 }
  0x14   : > { %s380_s16 = scalar_lea.vmem (!%p342_p9), [#allocation2], %s1069_s30 }
  0x15   : > { %s1003_s22 = sshll.u32 (!%p342_p9), %s380_s16, 4  ;;  %s1004_s22 = int_to_ptr.vmem [resolvable:$true] %s1003_s22 }
  0x16   : > { %v405_v0 = vld [vmem:[%s1651_s1 + $0x8] sm:$0xff]  ;;  %v404_v1 = vld [vmem:[%s1651_s1] sm:$0xff]  ;;  %s1658_s14 = smov (!%p382_p10, %s1070_s14), 31  ;;  %vm409_vm0 = vcmask 130048   ;;  %v1195_v12 = vld [vmem:[%s1638_s3 + $0x38] sm:$0xff] }
  0x17   : > { %472 = vmatpush.msra.mxu0 %v405_v0  ;;  %s1071_s15 = sshll.u32 %s1658_s14, 3  ;;  %615 = vmatpush.bf16.msra.mxu1 %v1195_v12  ;;  %v1194_v14 = vld [vmem:[%s1638_s3 + $0x30] sm:$0xff]  ;;  %v1193_v15 = vld [vmem:[%s1638_s3 + $0x28] sm:$0xff]  ;;  %v1192_v17 = vld [vmem:[%s1638_s3 + $0x20] sm:$0xff] }
  0x18   : > { %s1440_s24 = scalar_lea.vmem %s1652_s0, %s1071_s15  ;;  %v1191_v18 = vld [vmem:[%s1638_s3 + $0x18] sm:$0xff]  ;;  %v1190_v20 = vld [vmem:[%s1638_s3 + $0x10] sm:$0xff]  ;;  %v1189_v21 = vld [vmem:[%s1638_s3 + $0x8] sm:$0xff]  ;;  %s1001_s15 = scalar_lea.hbm %s1646_s11, %s1185_s12 }
  0x19   : > { %473 = vmatpush.msra.mxu0 %v404_v1  ;;  %v387_v2 = vld [vmem:[%s1440_s24] sm:$0xff]  ;;  %v388_v3 = vld [vmem:[%s1440_s24 + $0x8] sm:$0xff]  ;;  %v389_v4 = vld [vmem:[%s1440_s24 + $0x10] sm:$0xff]  ;;  %s1005_s0 = sshll.u32 %s1001_s15, 4  ;;  %s1277_s12 = scalar_lea.hbm %s1646_s11, 16  ;;  %s1006_s0 = int_to_ptr.hbm [resolvable:$true] %s1005_s0 }
  0x1a   : > { %1072 = vmatmul.msk.f32.vlgmr.msra.gmra.mxu0 %vm409_vm0, %v387_v2  ;;  %v390_v5 = vld [vmem:[%s1440_s24 + $0x18] sm:$0xff]  ;;  %v391_v6 = vld [vmem:[%s1440_s24 + $0x20] sm:$0xff]  ;;  %v392_v7 = vld [vmem:[%s1440_s24 + $0x28] sm:$0xff]  ;;  %s1271_s25 = sshra.s32 %s1006_s0, 4  ;;  %s1272_s25 = int_to_ptr.hbm [resolvable:$true] %s1271_s25 }
  0x1b   : > { %v393_v8 = vld [vmem:[%s1440_s24 + $0x30] sm:$0xff]  ;;  %v394_v9 = vld [vmem:[%s1440_s24 + $0x38] sm:$0xff]  ;;  %v395_v10 = vld [vmem:[%s1440_s24 + $0x40] sm:$0xff]  ;;  %616 = vmatpush.bf16.msra.mxu1 %v1194_v14  ;;  %s1273_s1 = scalar_lea.hbm %s1272_s25, 8  ;;  %p1278_p0 = scmp.lt.s32.totalorder %s1272_s25, %s1646_s11 }
  0x1c   : > { %v396_v11 = vld [vmem:[%s1440_s24 + $0x48] sm:$0xff]  ;;  %v397_v13 = vld [vmem:[%s1440_s24 + $0x50] sm:$0xff]  ;;  %v398_v16 = vld [vmem:[%s1440_s24 + $0x58] sm:$0xff]  ;;  %p1274_p11 = scmp.ne.s32.totalorder %s1272_s25, %s1273_s1  ;;  %p1279_p1 = scmp.lt.s32.totalorder %s1277_s12, %s1273_s1 }
  0x1d   : > { %v399_v19 = vld [vmem:[%s1440_s24 + $0x60] sm:$0xff]  ;;  %v400_v22 = vld [vmem:[%s1440_s24 + $0x68] sm:$0xff]  ;;  %v401_v24 = vld [vmem:[%s1440_s24 + $0x70] sm:$0xff] }
  0x1e   : > { %v1188_v23 = vld [vmem:[%s1638_s3] sm:$0xff]  ;;  %v402_v25 = vld [vmem:[%s1440_s24 + $0x78] sm:$0xff]  ;;  %s991_s24 = scalar_lea.sflag [#allocation3], %s378_s29  ;;  %p1275_p12 = pnand %p1274_p11, %p1420_p5 }
  0x1f   : > { %617 = vmatpush.bf16.msra.mxu1 %v1193_v15  ;;  %v1501_v27 = vld [vmem:[%s1637_s2] ss:$0 sm:$0xff]  ;;  %v1203_v2 = vld [vmem:[%s1640_s5 + $0x38] sm:$0xff]  ;;  %p1280_p2 = por %p1279_p1, %p1278_p0 }
  0x20   : > { %756 = vmatpush.bf16.msra.mxu2 %v1203_v2  ;;  %p1276_p13 = pneg %p1275_p12 }
  0x22   : > { %1073 = vmatmul.msk.f32.gmra.mxu0 %vm409_vm0, %v388_v3  ;;  %p1281_p3 = pnand %p1280_p2, %p1276_p13 }
  0x23   : > { %618 = vmatpush.bf16.msra.mxu1 %v1192_v17  ;;  %v1198_v17 = vld [vmem:[%s1640_s5 + $0x10] sm:$0xff] }
  0x27   : > { %619 = vmatpush.bf16.msra.mxu1 %v1191_v18 }
  0x2a   : > { %1074 = vmatmul.msk.f32.gmra.mxu0 %vm409_vm0, %v389_v4 }
  0x2b   : > { %620 = vmatpush.bf16.msra.mxu1 %v1190_v20  ;;  %v1196_v20 = vld [vmem:[%s1640_s5] sm:$0xff] }
  0x2f   : > { %621 = vmatpush.bf16.msra.mxu1 %v1189_v21 }
  0x32   : > { %1075 = vmatmul.msk.f32.gmra.mxu0 %vm409_vm0, %v390_v5 }
  0x33   : > { %622 = vmatpush.bf16.msra.mxu1 %v1188_v23 }
  0x3a   : > { %1076 = vmatmul.msk.f32.gmra.mxu0 %vm409_vm0, %v391_v6  ;;  %v1202_v6 = vld [vmem:[%s1640_s5 + $0x30] sm:$0xff] }
  0x3b   : > { %757 = vmatpush.bf16.msra.mxu2 %v1202_v6  ;;  %v1211_v6 = vld [vmem:[%s1642_s7 + $0x38] sm:$0xff] }
  0x3c   : > { %897 = vmatpush.bf16.msra.mxu3 %v1211_v6 }
  0x42   : > { %1077 = vmatmul.msk.f32.gmra.mxu0 %vm409_vm0, %v392_v7 }
  0x4a   : > { %1078 = vmatmul.msk.f32.gmra.mxu0 %vm409_vm0, %v393_v8  ;;  %v1201_v8 = vld [vmem:[%s1640_s5 + $0x28] sm:$0xff] }
  0x4b   : > { %758 = vmatpush.bf16.msra.mxu2 %v1201_v8  ;;  %v1210_v8 = vld [vmem:[%s1642_s7 + $0x30] sm:$0xff] }
  0x4c   : > { %898 = vmatpush.bf16.msra.mxu3 %v1210_v8 }
  0x52   : > { %1079 = vmatmul.msk.f32.gmra.mxu0 %vm409_vm0, %v394_v9  ;;  %v1200_v9 = vld [vmem:[%s1640_s5 + $0x20] sm:$0xff] }
  0x53   : > { %759 = vmatpush.bf16.msra.mxu2 %v1200_v9  ;;  %v1209_v9 = vld [vmem:[%s1642_s7 + $0x28] sm:$0xff] }
  0x54   : > { %899 = vmatpush.bf16.msra.mxu3 %v1209_v9 }
  0x5a   : > { %1080 = vmatmul.msk.f32.gmra.mxu0 %vm409_vm0, %v395_v10 }
  0x62   : > { %1081 = vmatmul.msk.f32.gmra.mxu0 %vm409_vm0, %v396_v11 }
  0x6a   : > { %1082 = vmatmul.msk.f32.gmra.mxu0 %vm409_vm0, %v397_v13  ;;  %v1199_v13 = vld [vmem:[%s1640_s5 + $0x18] sm:$0xff] }
  0x6b   : > { %760 = vmatpush.bf16.msra.mxu2 %v1199_v13  ;;  %v1208_v13 = vld [vmem:[%s1642_s7 + $0x20] sm:$0xff] }
  0x6c   : > { %900 = vmatpush.bf16.msra.mxu3 %v1208_v13 }
  0x6f   : > { %761 = vmatpush.bf16.msra.mxu2 %v1198_v17 }
  0x72   : > { %1083 = vmatmul.msk.f32.gmra.mxu0 %vm409_vm0, %v398_v16 }
  0x7a   : > { %1084 = vmatmul.msk.f32.gmra.mxu0 %vm409_vm0, %v399_v19  ;;  %v1197_v19 = vld [vmem:[%s1640_s5 + $0x8] sm:$0xff] }
  0x7b   : > { %762 = vmatpush.bf16.msra.mxu2 %v1197_v19  ;;  %v1206_v19 = vld [vmem:[%s1642_s7 + $0x10] sm:$0xff] }
  0x7f   : > { %763 = vmatpush.bf16.msra.mxu2 %v1196_v20 }
  0x82   : > { %1085 = vmatmul.msk.f32.gmra.mxu0 %vm409_vm0, %v400_v22 }
  0x8a   : > { %1086 = vmatmul.msk.f32.gmra.mxu0 %vm409_vm0, %v401_v24 }
  0x92   : > { %1087 = vmatmul.msk.f32.gmra.mxu0 %vm409_vm0, %v402_v25 }
  0x97   : > { %v475_v26 = vpop.f32.mrf.mxu0 }
  0x98   : > { %v476_v28 = vadd.f32 %v1501_v27, %v475_v26 }
  0x9a   : > { %v523_v31 = vmax.f32 %v476_v28, 0.0 }
  0x9f   : > { %v478_v29 = vpop.f32.mrf.mxu0 }
  0xa0   : > { %v479_v30 = vadd.f32 %v1501_v27, %v478_v29  ;;  %v1546_v29 = vld [vmem:[%s1639_s4] ss:$0 sm:$0xff] }
  0xa2   : > { %v524_v32 = vmax.f32 %v479_v30, 0.0 }
  0xa4   : > { %v540_v33 = vpack.c.bf16 %v524_v32, %v523_v31 }
  0xa6   : > { %623 = vmatmul.bf16.vlgmr.msra.gmra.mxu1 %v540_v33 }
  0xa7   : > { %v481_v34 = vpop.f32.mrf.mxu0 }
  0xa8   : > { %v482_v35 = vadd.f32 %v1501_v27, %v481_v34 }
  0xaa   : > { %v525_v38 = vmax.f32 %v482_v35, 0.0 }
  0xaf   : > { %v484_v36 = vpop.f32.mrf.mxu0 }
  0xb0   : > { %v485_v37 = vadd.f32 %v1501_v27, %v484_v36 }
  0xb2   : > { %v526_v39 = vmax.f32 %v485_v37, 0.0 }
  0xb4   : > { %v541_v40 = vpack.c.bf16 %v526_v39, %v525_v38 }
  0xb6   : > { %628 = vmatmul.bf16.gmra.mxu1 %v541_v40 }
  0xb7   : > { %v487_v41 = vpop.f32.mrf.mxu0 }
  0xb8   : > { %v488_v42 = vadd.f32 %v1501_v27, %v487_v41 }
  0xba   : > { %v527_v45 = vmax.f32 %v488_v42, 0.0 }
  0xbf   : > { %v490_v43 = vpop.f32.mrf.mxu0 }
  0xc0   : > { %v491_v44 = vadd.f32 %v1501_v27, %v490_v43 }
  0xc2   : > { %v528_v46 = vmax.f32 %v491_v44, 0.0 }
  0xc4   : > { %v542_v47 = vpack.c.bf16 %v528_v46, %v527_v45 }
  0xc6   : > { %633 = vmatmul.bf16.gmra.mxu1 %v542_v47 }
  0xc7   : > { %v493_v48 = vpop.f32.mrf.mxu0 }
  0xc8   : > { %v494_v49 = vadd.f32 %v1501_v27, %v493_v48 }
  0xca   : > { %v529_v52 = vmax.f32 %v494_v49, 0.0 }
  0xcf   : > { %v496_v50 = vpop.f32.mrf.mxu0 }
  0xd0   : > { %v497_v51 = vadd.f32 %v1501_v27, %v496_v50 }
  0xd2   : > { %v530_v53 = vmax.f32 %v497_v51, 0.0 }
  0xd4   : > { %v543_v54 = vpack.c.bf16 %v530_v53, %v529_v52 }
  0xd6   : > { %638 = vmatmul.bf16.gmra.mxu1 %v543_v54 }
  0xd7   : > { %v499_v55 = vpop.f32.mrf.mxu0 }
  0xd8   : > { %v500_v56 = vadd.f32 %v1501_v27, %v499_v55 }
  0xda   : > { %v531_v59 = vmax.f32 %v500_v56, 0.0 }
  0xdf   : > { %v502_v57 = vpop.f32.mrf.mxu0 }
  0xe0   : > { %v503_v58 = vadd.f32 %v1501_v27, %v502_v57 }
  0xe2   : > { %v532_v60 = vmax.f32 %v503_v58, 0.0 }
  0xe4   : > { %v544_v61 = vpack.c.bf16 %v532_v60, %v531_v59 }
  0xe6   : > { %643 = vmatmul.bf16.gmra.mxu1 %v544_v61 }
  0xe7   : > { %v505_v62 = vpop.f32.mrf.mxu0 }
  0xe8   : > { %v506_v63 = vadd.f32 %v1501_v27, %v505_v62 }
  0xea   : > { %v533_v3 = vmax.f32 %v506_v63, 0.0 }
  0xef   : > { %v508_v0 = vpop.f32.mrf.mxu0 }
  0xf0   : > { %v509_v1 = vadd.f32 %v1501_v27, %v508_v0 }
  0xf2   : > { %v534_v4 = vmax.f32 %v509_v1, 0.0 }
  0xf4   : > { %v545_v5 = vpack.c.bf16 %v534_v4, %v533_v3 }
  0xf6   : > { %648 = vmatmul.bf16.gmra.mxu1 %v545_v5 }
  0xf7   : > { %v511_v7 = vpop.f32.mrf.mxu0 }
  0xf8   : > { %v512_v10 = vadd.f32 %v1501_v27, %v511_v7 }
  0xfa   : > { %v535_v14 = vmax.f32 %v512_v10, 0.0 }
  0xff   : > { %v514_v11 = vpop.f32.mrf.mxu0 }
 0x100   : > { %v515_v12 = vadd.f32 %v1501_v27, %v514_v11 }
 0x102   : > { %v536_v15 = vmax.f32 %v515_v12, 0.0 }
 0x104   : > { %v546_v16 = vpack.c.bf16 %v536_v15, %v535_v14 }
 0x106   : > { %653 = vmatmul.bf16.gmra.mxu1 %v546_v16 }
 0x107   : > { %v517_v18 = vpop.f32.mrf.mxu0 }
 0x108   : > { %v518_v21 = vadd.f32 %v1501_v27, %v517_v18  ;;  %v1207_v18 = vld [vmem:[%s1642_s7 + $0x18] sm:$0xff] }
 0x109   : > { %901 = vmatpush.bf16.msra.mxu3 %v1207_v18 }
 0x10a   : > { %v537_v24 = vmax.f32 %v518_v21, 0.0 }
 0x10d   : > { %902 = vmatpush.bf16.msra.mxu3 %v1206_v19 }
 0x10f   : > { %v520_v22 = vpop.f32.mrf.mxu0 }
 0x110   : > { %v521_v23 = vadd.f32 %v1501_v27, %v520_v22  ;;  %v1205_v22 = vld [vmem:[%s1642_s7 + $0x8] sm:$0xff] }
 0x111   : > { %903 = vmatpush.bf16.msra.mxu3 %v1205_v22 }
 0x112   : > { %v538_v25 = vmax.f32 %v521_v23, 0.0 }
 0x114   : > { %v547_v26 = vpack.c.bf16 %v538_v25, %v537_v24 }
 0x116   : > { %658 = vmatmul.bf16.gmra.mxu1 %v547_v26  ;;  %v1204_v26 = vld [vmem:[%s1642_s7] sm:$0xff] }
 0x117   : > { %904 = vmatpush.bf16.msra.mxu3 %v1204_v26 }
 0x123   : > { %v624_v28 = vpop.f32.mrf.mxu1 }
 0x124   : > { %v625_v30 = vadd.f32 %v1546_v29, %v624_v28 }
 0x126   : > { %v664_v33 = vmax.f32 %v625_v30, 0.0 }
 0x12b   : > { %v626_v31 = vpop.f32.mrf.mxu1 }
 0x12c   : > { %v627_v32 = vadd.f32 %v1546_v29, %v626_v31  ;;  %v1255_v31 = vld [vmem:[%s1641_s6] ss:$0 sm:$0xff] }
 0x12e   : > { %v665_v34 = vmax.f32 %v627_v32, 0.0 }
 0x130   : > { %v681_v35 = vpack.c.bf16 %v665_v34, %v664_v33 }
 0x132   : > { %764 = vmatmul.bf16.vlgmr.msra.gmra.mxu2 %v681_v35 }
 0x133   : > { %v629_v27 = vpop.f32.mrf.mxu1 }
 0x134   : > { %v630_v36 = vadd.f32 %v1546_v29, %v629_v27 }
 0x136   : > { %v666_v39 = vmax.f32 %v630_v36, 0.0 }
 0x13b   : > { %v631_v37 = vpop.f32.mrf.mxu1 }
 0x13c   : > { %v632_v38 = vadd.f32 %v1546_v29, %v631_v37 }
 0x13e   : > { %v667_v40 = vmax.f32 %v632_v38, 0.0 }
 0x140   : > { %v682_v41 = vpack.c.bf16 %v667_v40, %v666_v39 }
 0x142   : > { %769 = vmatmul.bf16.gmra.mxu2 %v682_v41 }
 0x143   : > { %v634_v42 = vpop.f32.mrf.mxu1 }
 0x144   : > { %v635_v43 = vadd.f32 %v1546_v29, %v634_v42 }
 0x146   : > { %v668_v46 = vmax.f32 %v635_v43, 0.0 }
 0x14b   : > { %v636_v44 = vpop.f32.mrf.mxu1 }
 0x14c   : > { %v637_v45 = vadd.f32 %v1546_v29, %v636_v44 }
 0x14e   : > { %v669_v47 = vmax.f32 %v637_v45, 0.0 }
 0x150   : > { %v683_v48 = vpack.c.bf16 %v669_v47, %v668_v46 }
 0x152   : > { %774 = vmatmul.bf16.gmra.mxu2 %v683_v48 }
 0x153   : > { %v639_v49 = vpop.f32.mrf.mxu1 }
 0x154   : > { %v640_v50 = vadd.f32 %v1546_v29, %v639_v49 }
 0x156   : > { %v670_v53 = vmax.f32 %v640_v50, 0.0 }
 0x15b   : > { %v641_v51 = vpop.f32.mrf.mxu1 }
 0x15c   : > { %v642_v52 = vadd.f32 %v1546_v29, %v641_v51 }
 0x15e   : > { %v671_v54 = vmax.f32 %v642_v52, 0.0 }
 0x160   : > { %v684_v55 = vpack.c.bf16 %v671_v54, %v670_v53 }
 0x162   : > { %779 = vmatmul.bf16.gmra.mxu2 %v684_v55 }
 0x163   : > { %v644_v56 = vpop.f32.mrf.mxu1 }
 0x164   : > { %v645_v57 = vadd.f32 %v1546_v29, %v644_v56 }
 0x166   : > { %v672_v60 = vmax.f32 %v645_v57, 0.0 }
 0x16b   : > { %v646_v58 = vpop.f32.mrf.mxu1 }
 0x16c   : > { %v647_v59 = vadd.f32 %v1546_v29, %v646_v58 }
 0x16e   : > { %v673_v61 = vmax.f32 %v647_v59, 0.0 }
 0x170   : > { %v685_v62 = vpack.c.bf16 %v673_v61, %v672_v60 }
 0x172   : > { %784 = vmatmul.bf16.gmra.mxu2 %v685_v62 }
 0x173   : > { %v649_v63 = vpop.f32.mrf.mxu1 }
 0x174   : > { %v650_v0 = vadd.f32 %v1546_v29, %v649_v63 }
 0x176   : > { %v674_v3 = vmax.f32 %v650_v0, 0.0 }
 0x17b   : > { %v651_v1 = vpop.f32.mrf.mxu1 }
 0x17c   : > { %v652_v2 = vadd.f32 %v1546_v29, %v651_v1 }
 0x17e   : > { %v675_v4 = vmax.f32 %v652_v2, 0.0 }
 0x180   : > { %v686_v5 = vpack.c.bf16 %v675_v4, %v674_v3 }
 0x182   : > { %789 = vmatmul.bf16.gmra.mxu2 %v686_v5 }
 0x183   : > { %v654_v7 = vpop.f32.mrf.mxu1 }
 0x184   : > { %v655_v10 = vadd.f32 %v1546_v29, %v654_v7 }
 0x186   : > { %v676_v14 = vmax.f32 %v655_v10, 0.0 }
 0x18b   : > { %v656_v11 = vpop.f32.mrf.mxu1 }
 0x18c   : > { %v657_v12 = vadd.f32 %v1546_v29, %v656_v11 }
 0x18e   : > { %v677_v15 = vmax.f32 %v657_v12, 0.0 }
 0x190   : > { %v687_v16 = vpack.c.bf16 %v677_v15, %v676_v14 }
 0x192   : > { %794 = vmatmul.bf16.gmra.mxu2 %v687_v16 }
 0x193   : > { %v659_v17 = vpop.f32.mrf.mxu1 }
 0x194   : > { %v660_v20 = vadd.f32 %v1546_v29, %v659_v17 }
 0x196   : > { %v678_v24 = vmax.f32 %v660_v20, 0.0 }
 0x19b   : > { %v661_v21 = vpop.f32.mrf.mxu1 }
 0x19c   : > { %v662_v23 = vadd.f32 %v1546_v29, %v661_v21 }
 0x19e   : > { %v679_v25 = vmax.f32 %v662_v23, 0.0 }
 0x1a0   : > { %v688_v28 = vpack.c.bf16 %v679_v25, %v678_v24 }
 0x1a2   : > { %799 = vmatmul.bf16.gmra.mxu2 %v688_v28 }
 0x1b5   : > { %v765_v30 = vpop.f32.mrf.mxu2 }
 0x1b6   : > { %v766_v32 = vadd.f32 %v1255_v31, %v765_v30 }
 0x1b8   : > { %v805_v35 = vmax.f32 %v766_v32, 0.0 }
 0x1bd   : > { %v767_v33 = vpop.f32.mrf.mxu2 }
 0x1be   : > { %v768_v34 = vadd.f32 %v1255_v31, %v767_v33 }
 0x1c0   : > { %v806_v29 = vmax.f32 %v768_v34, 0.0 }
 0x1c2   : > { %v822_v27 = vpack.c.bf16 %v806_v29, %v805_v35 }
 0x1c4   : > { %905 = vmatmul.bf16.vlgmr.msra.gmra.mxu3 %v822_v27 }
 0x1c5   : > { %v770_v36 = vpop.f32.mrf.mxu2 }
 0x1c6   : > { %v771_v37 = vadd.f32 %v1255_v31, %v770_v36  ;;  %v1256_v36 = vld [vmem:[%s1643_s8] ss:$0 sm:$0xff] }
 0x1c8   : > { %v807_v40 = vmax.f32 %v771_v37, 0.0 }
 0x1cd   : > { %v772_v38 = vpop.f32.mrf.mxu2 }
 0x1ce   : > { %v773_v39 = vadd.f32 %v1255_v31, %v772_v38 }
 0x1d0   : > { %v808_v41 = vmax.f32 %v773_v39, 0.0 }
 0x1d2   : > { %v823_v42 = vpack.c.bf16 %v808_v41, %v807_v40 }
 0x1d4   : > { %910 = vmatmul.bf16.gmra.mxu3 %v823_v42 }
 0x1d5   : > { %v775_v43 = vpop.f32.mrf.mxu2 }
 0x1d6   : > { %v776_v44 = vadd.f32 %v1255_v31, %v775_v43 }
 0x1d8   : > { %v809_v47 = vmax.f32 %v776_v44, 0.0 }
 0x1dd   : > { %v777_v45 = vpop.f32.mrf.mxu2 }
 0x1de   : > { %v778_v46 = vadd.f32 %v1255_v31, %v777_v45 }
 0x1e0   : > { %v810_v48 = vmax.f32 %v778_v46, 0.0 }
 0x1e2   : > { %v824_v49 = vpack.c.bf16 %v810_v48, %v809_v47 }
 0x1e4   : > { %915 = vmatmul.bf16.gmra.mxu3 %v824_v49 }
 0x1e5   : > { %v780_v50 = vpop.f32.mrf.mxu2 }
 0x1e6   : > { %v781_v51 = vadd.f32 %v1255_v31, %v780_v50 }
 0x1e8   : > { %v811_v54 = vmax.f32 %v781_v51, 0.0 }
 0x1ed   : > { %v782_v52 = vpop.f32.mrf.mxu2 }
 0x1ee   : > { %v783_v53 = vadd.f32 %v1255_v31, %v782_v52 }
 0x1f0   : > { %v812_v55 = vmax.f32 %v783_v53, 0.0 }
 0x1f2   : > { %v825_v56 = vpack.c.bf16 %v812_v55, %v811_v54 }
 0x1f4   : > { %920 = vmatmul.bf16.gmra.mxu3 %v825_v56 }
 0x1f5   : > { %v785_v57 = vpop.f32.mrf.mxu2 }
 0x1f6   : > { %v786_v58 = vadd.f32 %v1255_v31, %v785_v57  ;;  %v963_v57 = vld [vmem:[%s1645_s10] sm:$0xff] }
 0x1f8   : > { %v813_v61 = vmax.f32 %v786_v58, 0.0  ;;  %v1321_v58 = vmov 0  }
 0x1f9   : > { %1252 = vset.pattern.permute.xlu0 %v1321_v58 }
 0x1fa   : > { %966 = vperm.xlu0 %1252, %v963_v57  }
 0x1fd   : > { %v787_v59 = vpop.f32.mrf.mxu2 }
 0x1fe   : > { %v788_v60 = vadd.f32 %v1255_v31, %v787_v59 }
 0x200   : > { %v814_v62 = vmax.f32 %v788_v60, 0.0 }
 0x202   : > { %v826_v63 = vpack.c.bf16 %v814_v62, %v813_v61 }
 0x204   : > { %925 = vmatmul.bf16.gmra.mxu3 %v826_v63 }
 0x205   : > { %v790_v0 = vpop.f32.mrf.mxu2 }
 0x206   : > { %v791_v1 = vadd.f32 %v1255_v31, %v790_v0 }
 0x208   : > { %v815_v4 = vmax.f32 %v791_v1, 0.0 }
 0x20d   : > { %v792_v2 = vpop.f32.mrf.mxu2 }
 0x20e   : > { %v793_v3 = vadd.f32 %v1255_v31, %v792_v2 }
 0x210   : > { %v816_v5 = vmax.f32 %v793_v3, 0.0 }
 0x212   : > { %v827_v6 = vpack.c.bf16 %v816_v5, %v815_v4 }
 0x214   : > { %930 = vmatmul.bf16.gmra.mxu3 %v827_v6 }
 0x215   : > { %v795_v7 = vpop.f32.mrf.mxu2 }
 0x216   : > { %v796_v8 = vadd.f32 %v1255_v31, %v795_v7 }
 0x218   : > { %v817_v11 = vmax.f32 %v796_v8, 0.0  ;;  %v962_v8 = vld [vmem:[%s1644_s9] sm:$0xff] }
 0x21d   : > { %v797_v9 = vpop.f32.mrf.mxu2 }
 0x21e   : > { %v798_v10 = vadd.f32 %v1255_v31, %v797_v9 }
 0x220   : > { %v818_v12 = vmax.f32 %v798_v10, 0.0 }
 0x222   : > { %v828_v13 = vpack.c.bf16 %v818_v12, %v817_v11 }
 0x224   : > { %935 = vmatmul.bf16.gmra.mxu3 %v828_v13 }
 0x225   : > { %v800_v14 = vpop.f32.mrf.mxu2 }
 0x226   : > { %v801_v15 = vadd.f32 %v1255_v31, %v800_v14 }
 0x228   : > { %v819_v18 = vmax.f32 %v801_v15, 0.0 }
 0x22d   : > { %v802_v16 = vpop.f32.mrf.mxu2 }
 0x22e   : > { %v803_v17 = vadd.f32 %v1255_v31, %v802_v16 }
 0x230   : > { %v820_v19 = vmax.f32 %v803_v17, 0.0 }
 0x232   : > { %v829_v20 = vpack.c.bf16 %v820_v19, %v819_v18 }
 0x234   : > { %940 = vmatmul.bf16.gmra.mxu3 %v829_v20 }
 0x247   : > { %v1591_v21 = vpop.f32.mrf.mxu3 }
 0x248   : > { %v907_v5 = vadd.f32 %v1256_v36, %v1591_v21 }
 0x24a   : > { %v946_v7 = vmax.f32 %v907_v5, 0.0 }
 0x24f   : > { %v908_v22 = vpop.f32.mrf.mxu3 }
 0x250   : > { %v909_v3 = vadd.f32 %v1256_v36, %v908_v22 }
 0x252   : > { %v947_v6 = vmax.f32 %v909_v3, 0.0 }
 0x257   : > { %v911_v23 = vpop.f32.mrf.mxu3 }
 0x258   : > { %v912_v1 = vadd.f32 %v1256_v36, %v911_v23 }
 0x25a   : > { %v948_v4 = vmax.f32 %v912_v1, 0.0 }
 0x25f   : > { %v913_v24 = vpop.f32.mrf.mxu3 }
 0x260   : > { %v914_v63 = vadd.f32 %v1256_v36, %v913_v24 }
 0x262   : > { %v949_v2 = vmax.f32 %v914_v63, 0.0 }
 0x267   : > { %v916_v25 = vpop.f32.mrf.mxu3 }
 0x268   : > { %v917_v61 = vadd.f32 %v1256_v36, %v916_v25 }
 0x26a   : > { %v950_v0 = vmax.f32 %v917_v61, 0.0 }
 0x26c   : > { %v967_v9 = vpop.permute.xlu0 %966 }
 0x26f   : > { %v918_v26 = vpop.f32.mrf.mxu3 }
 0x270   : > { %v919_v59 = vadd.f32 %v1256_v36, %v918_v26 }
 0x272   : > { %v951_v62 = vmax.f32 %v919_v59, 0.0 }
 0x277   : > { %v921_v28 = vpop.f32.mrf.mxu3 }
 0x278   : > { %v922_v55 = vadd.f32 %v1256_v36, %v921_v28 }
 0x27a   : > { %v952_v60 = vmax.f32 %v922_v55, 0.0 }
 0x27f   : > { %v923_v30 = vpop.f32.mrf.mxu3 }
 0x280   : > { %v924_v53 = vadd.f32 %v1256_v36, %v923_v30 }
 0x282   : > { %v953_v56 = vmax.f32 %v924_v53, 0.0 }
 0x287   : > { %v926_v32 = vpop.f32.mrf.mxu3 }
 0x288   : > { %v927_v51 = vadd.f32 %v1256_v36, %v926_v32 }
 0x28a   : > { %v954_v54 = vmax.f32 %v927_v51, 0.0 }
 0x28f   : > { %v928_v33 = vpop.f32.mrf.mxu3 }
 0x290   : > { %v929_v49 = vadd.f32 %v1256_v36, %v928_v33 }
 0x292   : > { %v955_v52 = vmax.f32 %v929_v49, 0.0 }
 0x297   : > { %v931_v34 = vpop.f32.mrf.mxu3 }
 0x298   : > { %v932_v47 = vadd.f32 %v1256_v36, %v931_v34 }
 0x29a   : > { %v956_v50 = vmax.f32 %v932_v47, 0.0 }
 0x29f   : > { %v933_v35 = vpop.f32.mrf.mxu3 }
 0x2a0   : > { %v934_v45 = vadd.f32 %v1256_v36, %v933_v35 }
 0x2a2   : > { %v957_v48 = vmax.f32 %v934_v45, 0.0 }
 0x2a7   : > { %v936_v29 = vpop.f32.mrf.mxu3 }
 0x2a8   : > { %v937_v43 = vadd.f32 %v1256_v36, %v936_v29 }
 0x2aa   : > { %v958_v46 = vmax.f32 %v937_v43, 0.0 }
 0x2af   : > { %v938_v27 = vpop.f32.mrf.mxu3 }
 0x2b0   : > { %v939_v41 = vadd.f32 %v1256_v36, %v938_v27 }
 0x2b2   : > { %v959_v44 = vmax.f32 %v939_v41, 0.0 }
 0x2b7   : > { %v941_v31 = vpop.f32.mrf.mxu3 }
 0x2b8   : > { %v942_v39 = vadd.f32 %v1256_v36, %v941_v31 }
 0x2ba   : > { %v960_v42 = vmax.f32 %v942_v39, 0.0 }
 0x2bf   : > { %v943_v37 = vpop.f32.mrf.mxu3 }
 0x2c0   : > { %v944_v38 = vadd.f32 %v1256_v36, %v943_v37 }
 0x2c2   : > { %v961_v40 = vmax.f32 %v944_v38, 0.0 }
 0x2c4   : > { %969 = vmatpush.xpose.msrb.mxu0 %v961_v40 }
 0x2c8   : > { %970 = vmatpush.xpose.msrb.mxu0 %v960_v42 }
 0x2cc   : > { %971 = vmatpush.xpose.msrb.mxu0 %v959_v44 }
 0x2d0   : > { %972 = vmatpush.xpose.msrb.mxu0 %v958_v46 }
 0x2d4   : > { %973 = vmatpush.xpose.msrb.mxu0 %v957_v48 }
 0x2d8   : > { %974 = vmatpush.xpose.msrb.mxu0 %v956_v50 }
 0x2dc   : > { %975 = vmatpush.xpose.msrb.mxu0 %v955_v52 }
 0x2e0   : > { %976 = vmatpush.xpose.msrb.mxu0 %v954_v54 }
 0x2e4   : > { %977 = vmatpush.xpose.msrb.mxu0 %v953_v56 }
 0x2e8   : > { %978 = vmatpush.xpose.msrb.mxu0 %v952_v60 }
 0x2ec   : > { %979 = vmatpush.xpose.msrb.mxu0 %v951_v62 }
 0x2f0   : > { %980 = vmatpush.xpose.msrb.mxu0 %v950_v0 }
 0x2f4   : > { %981 = vmatpush.xpose.msrb.mxu0 %v949_v2 }
 0x2f8   : > { %982 = vmatpush.xpose.msrb.mxu0 %v948_v4 }
 0x2fc   : > { %983 = vmatpush.xpose.msrb.mxu0 %v947_v6 }
 0x300   : > { %984 = vmatpush.xpose.msrb.mxu0 %v946_v7 }
 0x303   : > { %985 = vmatmul.f32.vlgmr.msrb.gmra.mxu0 %v962_v8 }
 0x380   : > { %v986_v10 = vpop.f32.mrf.mxu0 }
 0x381   : > { %v987_v11 = vadd.f32 %v986_v10, %v967_v9 }
 0x383   : > { %989 = vst [vmem:[%s380_s16] sm:$0xff] %v987_v11 }
 0x384   : > { %1284 = shalt.err (!%p1281_p3)
}
 0x385   : > { %1212 = dma.vmem_to_hbm [thread:$0]  (%p1420_p5), %s1004_s22, 128, %s1006_s0, %s991_s24  }
 0x386 PF: > { %p1218_p4 = scmp.ge.s32.totalorder %s1319_s20, 2  ;;  %s1017_s29 = sand.u32 1, %s1307_s17  }
 0x387   : > { %s1018_s15 = scalar_lea.sflag [#allocation3], %s1017_s29 }
 0x388   : > { %p1215_p7 = pnand %p1218_p4, %p1424_p6 }
 0x38a   : > { %p1216_p8 = pneg %p1215_p7 }
 0x38c   : > { %1302 = dma.done.wait (%p1216_p8), %s1018_s15, 128  }
 0x38d   : > { %1304 = vsyncadd (%p1216_p8), %s1018_s15, 4294967168  ;;  %p21_p9 = scmp.ge.s32.totalorder %s1407_s23, 4   ;;  %s1653_s17 = smov %s1311_s18 }
 0x38e   : > { %s1654_s18 = smov %s1315_s19  ;;  %s1655_s19 = smov %s1418_s26 }
 0x38f   : > { %s1656_s20 = smov %s1407_s23  ;;  %23 = sbr.rel (!%p21_p9) target bundleno = 6 (0x6), region = 99 }
 0x394   :  { %1024 = vsyncpa [#allocation3], 1 }
 0x395   :  { %1026 = vsyncpa [#allocation3 + $0x1], 1 }

// kernel: tpu_custom_call.1
= control target key start
LH: loop header
LB: loop body
LE: loop exit
PB: predicated region body
PF: predicated region fallthrough
CT: control target
= control target key end

     0   :  { %s1635_s0 = inlined_call_operand.vmem [shape: f32[256,16], index: 0, kind: input, shape index: {}]   ;;  %s1636_s1 = inlined_call_operand.vmem [shape: f32[16,128], index: 1, kind: input, shape index: {}]   ;;  %s1637_s2 = inlined_call_operand.vmem [shape: f32[1,128], index: 2, kind: input, shape index: {}]   ;;  %s1638_s3 = inlined_call_operand.vmem [shape: bf16[128,128], index: 3, kind: input, shape index: {}]   ;;  %s1639_s4 = inlined_call_operand.vmem [shape: f32[1,128], index: 4, kind: input, shape index: {}]   ;;  %s1640_s5 = inlined_call_operand.vmem [shape: bf16[128,128], index: 5, kind: input, shape index: {}]   ;;  %s1641_s6 = inlined_call_operand.vmem [shape: f32[1,128], index: 6, kind: input, shape index: {}]   ;;  %s1642_s7 = inlined_call_operand.vmem [shape: bf16[128,128], index: 7, kind: input, shape index: {}]   ;;  %s1643_s8 = inlined_call_operand.vmem [shape: f32[1,128], index: 8, kind: input, shape index: {}]   ;;  %s1644_s9 = inlined_call_operand.vmem [shape: f32[8,128], index: 9, kind: input, shape index: {}]   ;;  %s1645_s10 = inlined_call_operand.vmem [shape: f32[8,1], index: 10, kind: input, shape index: {}]   ;;  %s1646_s11 = inlined_call_operand.hbm [shape: f32[8,256], index: 11, kind: output, shape index: {}]  }
   0x1   :  { %1647 = sst [smem:[#allocation5_spill]] %s1635_s0 }
   0x2   :  { %1648 = sst [smem:[#allocation6_spill]] %s1636_s1 }
   0x3   :  { %16 = vsyncpa [#allocation3], 0 }
   0x4   :  { %18 = vsyncpa [#allocation3 + $0x1], 0  ;;  %s1382_s17 = smov 0   ;;  %s1384_s18 = smov 0  }
   0x5   :  { %s1386_s19 = smov 0   ;;  %s1388_s20 = smov 0  }
   0x6 LB: > { %s1403_s21 = sadd.s32 4294967295, %s1319_s20   ;;  %s1065_s22 = sadd.s32 4294967294, %s1319_s20   ;;  %s1319_s20 = sphi %s1388_s20, %s1656_s20   ;;  %s1315_s19 = sphi %s1386_s19, %s1655_s19   ;;  %s1311_s18 = sphi %s1384_s18, %s1654_s18   ;;  %s1307_s17 = sphi %s1382_s17, %s1653_s17  }
   0x7   : > { %s1407_s23 = sadd.s32 1, %s1319_s20   ;;  %s267_s24 = sadd.s32 1, %s1315_s19 }
   0x8   : > { %s264_s25 = ssub.s32 %s1319_s20, %s1407_s23  ;;  %p277_p0 = scmp.ne.s32.totalorder %s1315_s19, %s1311_s18 }
   0x9   : > { %p265_p1 = scmp.eq.s32.totalorder %s264_s25, 0  ;;  %p278_p2 = scmp.eq.s32.totalorder %s1403_s21, 1 }
   0xa   : > { %p283_p3 = scmp.ne.s32.totalorder %s1311_s18, %s1307_s17  ;;  %p284_p4 = scmp.eq.s32.totalorder %s1065_s22, 1 }
   0xb   : > { %s1418_s26 = scalar_select %p265_p1, %s1315_s19, %s267_s24  }
   0xc   : > { %p1420_p5 = por %p278_p2, %p277_p0  ;;  %p1424_p6 = por %p284_p4, %p283_p3 }
   0xd   : > { %p1068_p7 = scmp.ge.s32.totalorder %s1319_s20, 1  ;;  %p341_p8 = scmp.lt.s32.totalorder %s1319_s20, 3 }
   0xf   : > { %p342_p9 = pnand %p1068_p7, %p341_p8 }
  0x10   : > { %s1651_s1 = sld [smem:[#allocation6_spill]] (!%p342_p9)  ;;  %s1070_s14 = sshll.u32 (!%p342_p9), %s1403_s21, 4 }
  0x11   : > { %345 = sbr.rel (%p342_p9) target bundleno = 902 (0x386), region = 64  ;;  %p382_p10 = scmp.lt.s32.totalorder (!%p342_p9), %s1070_s14, 31 }
  0x12   : > { %s1652_s0 = sld [smem:[#allocation5_spill]] (!%p342_p9)  ;;  %s378_s29 = sand.u32 (!%p342_p9), 1, %s1311_s18  }
  0x13   : > { %s1069_s30 = sshll.u32 (!%p342_p9), %s378_s29, 3  ;;  %s1185_s12 = sshll.u32 (!%p342_p9), %s1403_s21, 3 }
  0x14   : > { %s380_s16 = scalar_lea.vmem (!%p342_p9), [#allocation2], %s1069_s30 }
  0x15   : > { %s1003_s22 = sshll.u32 (!%p342_p9), %s380_s16, 4  ;;  %s1004_s22 = int_to_ptr.vmem [resolvable:$true] %s1003_s22 }
  0x16   : > { %v405_v0 = vld [vmem:[%s1651_s1 + $0x8] sm:$0xff]  ;;  %v404_v1 = vld [vmem:[%s1651_s1] sm:$0xff]  ;;  %s1658_s14 = smov (!%p382_p10, %s1070_s14), 31  ;;  %vm409_vm0 = vcmask 130048   ;;  %v1195_v12 = vld [vmem:[%s1638_s3 + $0x38] sm:$0xff] }
  0x17   : > { %472 = vmatpush.msra.mxu0 %v405_v0  ;;  %s1071_s15 = sshll.u32 %s1658_s14, 3  ;;  %615 = vmatpush.bf16.msra.mxu1 %v1195_v12  ;;  %v1194_v14 = vld [vmem:[%s1638_s3 + $0x30] sm:$0xff]  ;;  %v1193_v15 = vld [vmem:[%s1638_s3 + $0x28] sm:$0xff]  ;;  %v1192_v17 = vld [vmem:[%s1638_s3 + $0x20] sm:$0xff] }
  0x18   : > { %s1440_s24 = scalar_lea.vmem %s1652_s0, %s1071_s15  ;;  %v1191_v18 = vld [vmem:[%s1638_s3 + $0x18] sm:$0xff]  ;;  %v1190_v20 = vld [vmem:[%s1638_s3 + $0x10] sm:$0xff]  ;;  %v1189_v21 = vld [vmem:[%s1638_s3 + $0x8] sm:$0xff]  ;;  %s1001_s15 = scalar_lea.hbm %s1646_s11, %s1185_s12 }
  0x19   : > { %473 = vmatpush.msra.mxu0 %v404_v1  ;;  %v387_v2 = vld [vmem:[%s1440_s24] sm:$0xff]  ;;  %v388_v3 = vld [vmem:[%s1440_s24 + $0x8] sm:$0xff]  ;;  %v389_v4 = vld [vmem:[%s1440_s24 + $0x10] sm:$0xff]  ;;  %s1005_s0 = sshll.u32 %s1001_s15, 4  ;;  %s1277_s12 = scalar_lea.hbm %s1646_s11, 16  ;;  %s1006_s0 = int_to_ptr.hbm [resolvable:$true] %s1005_s0 }
  0x1a   : > { %1072 = vmatmul.msk.f32.vlgmr.msra.gmra.mxu0 %vm409_vm0, %v387_v2  ;;  %v390_v5 = vld [vmem:[%s1440_s24 + $0x18] sm:$0xff]  ;;  %v391_v6 = vld [vmem:[%s1440_s24 + $0x20] sm:$0xff]  ;;  %v392_v7 = vld [vmem:[%s1440_s24 + $0x28] sm:$0xff]  ;;  %s1271_s25 = sshra.s32 %s1006_s0, 4  ;;  %s1272_s25 = int_to_ptr.hbm [resolvable:$true] %s1271_s25 }
  0x1b   : > { %v393_v8 = vld [vmem:[%s1440_s24 + $0x30] sm:$0xff]  ;;  %v394_v9 = vld [vmem:[%s1440_s24 + $0x38] sm:$0xff]  ;;  %v395_v10 = vld [vmem:[%s1440_s24 + $0x40] sm:$0xff]  ;;  %616 = vmatpush.bf16.msra.mxu1 %v1194_v14  ;;  %s1273_s1 = scalar_lea.hbm %s1272_s25, 8  ;;  %p1278_p0 = scmp.lt.s32.totalorder %s1272_s25, %s1646_s11 }
  0x1c   : > { %v396_v11 = vld [vmem:[%s1440_s24 + $0x48] sm:$0xff]  ;;  %v397_v13 = vld [vmem:[%s1440_s24 + $0x50] sm:$0xff]  ;;  %v398_v16 = vld [vmem:[%s1440_s24 + $0x58] sm:$0xff]  ;;  %p1274_p11 = scmp.ne.s32.totalorder %s1272_s25, %s1273_s1  ;;  %p1279_p1 = scmp.lt.s32.totalorder %s1277_s12, %s1273_s1 }
  0x1d   : > { %v399_v19 = vld [vmem:[%s1440_s24 + $0x60] sm:$0xff]  ;;  %v400_v22 = vld [vmem:[%s1440_s24 + $0x68] sm:$0xff]  ;;  %v401_v24 = vld [vmem:[%s1440_s24 + $0x70] sm:$0xff] }
  0x1e   : > { %v1188_v23 = vld [vmem:[%s1638_s3] sm:$0xff]  ;;  %v402_v25 = vld [vmem:[%s1440_s24 + $0x78] sm:$0xff]  ;;  %s991_s24 = scalar_lea.sflag [#allocation3], %s378_s29  ;;  %p1275_p12 = pnand %p1274_p11, %p1420_p5 }
  0x1f   : > { %617 = vmatpush.bf16.msra.mxu1 %v1193_v15  ;;  %v1501_v27 = vld [vmem:[%s1637_s2] ss:$0 sm:$0xff]  ;;  %v1203_v2 = vld [vmem:[%s1640_s5 + $0x38] sm:$0xff]  ;;  %p1280_p2 = por %p1279_p1, %p1278_p0 }
  0x20   : > { %756 = vmatpush.bf16.msra.mxu2 %v1203_v2  ;;  %p1276_p13 = pneg %p1275_p12 }
  0x22   : > { %1073 = vmatmul.msk.f32.gmra.mxu0 %vm409_vm0, %v388_v3  ;;  %p1281_p3 = pnand %p1280_p2, %p1276_p13 }
  0x23   : > { %618 = vmatpush.bf16.msra.mxu1 %v1192_v17  ;;  %v1198_v17 = vld [vmem:[%s1640_s5 + $0x10] sm:$0xff] }
  0x27   : > { %619 = vmatpush.bf16.msra.mxu1 %v1191_v18 }
  0x2a   : > { %1074 = vmatmul.msk.f32.gmra.mxu0 %vm409_vm0, %v389_v4 }
  0x2b   : > { %620 = vmatpush.bf16.msra.mxu1 %v1190_v20  ;;  %v1196_v20 = vld [vmem:[%s1640_s5] sm:$0xff] }
  0x2f   : > { %621 = vmatpush.bf16.msra.mxu1 %v1189_v21 }
  0x32   : > { %1075 = vmatmul.msk.f32.gmra.mxu0 %vm409_vm0, %v390_v5 }
  0x33   : > { %622 = vmatpush.bf16.msra.mxu1 %v1188_v23 }
  0x3a   : > { %1076 = vmatmul.msk.f32.gmra.mxu0 %vm409_vm0, %v391_v6  ;;  %v1202_v6 = vld [vmem:[%s1640_s5 + $0x30] sm:$0xff] }
  0x3b   : > { %757 = vmatpush.bf16.msra.mxu2 %v1202_v6  ;;  %v1211_v6 = vld [vmem:[%s1642_s7 + $0x38] sm:$0xff] }
  0x3c   : > { %897 = vmatpush.bf16.msra.mxu3 %v1211_v6 }
  0x42   : > { %1077 = vmatmul.msk.f32.gmra.mxu0 %vm409_vm0, %v392_v7 }
  0x4a   : > { %1078 = vmatmul.msk.f32.gmra.mxu0 %vm409_vm0, %v393_v8  ;;  %v1201_v8 = vld [vmem:[%s1640_s5 + $0x28] sm:$0xff] }
  0x4b   : > { %758 = vmatpush.bf16.msra.mxu2 %v1201_v8  ;;  %v1210_v8 = vld [vmem:[%s1642_s7 + $0x30] sm:$0xff] }
  0x4c   : > { %898 = vmatpush.bf16.msra.mxu3 %v1210_v8 }
  0x52   : > { %1079 = vmatmul.msk.f32.gmra.mxu0 %vm409_vm0, %v394_v9  ;;  %v1200_v9 = vld [vmem:[%s1640_s5 + $0x20] sm:$0xff] }
  0x53   : > { %759 = vmatpush.bf16.msra.mxu2 %v1200_v9  ;;  %v1209_v9 = vld [vmem:[%s1642_s7 + $0x28] sm:$0xff] }
  0x54   : > { %899 = vmatpush.bf16.msra.mxu3 %v1209_v9 }
  0x5a   : > { %1080 = vmatmul.msk.f32.gmra.mxu0 %vm409_vm0, %v395_v10 }
  0x62   : > { %1081 = vmatmul.msk.f32.gmra.mxu0 %vm409_vm0, %v396_v11 }
  0x6a   : > { %1082 = vmatmul.msk.f32.gmra.mxu0 %vm409_vm0, %v397_v13  ;;  %v1199_v13 = vld [vmem:[%s1640_s5 + $0x18] sm:$0xff] }
  0x6b   : > { %760 = vmatpush.bf16.msra.mxu2 %v1199_v13  ;;  %v1208_v13 = vld [vmem:[%s1642_s7 + $0x20] sm:$0xff] }
  0x6c   : > { %900 = vmatpush.bf16.msra.mxu3 %v1208_v13 }
  0x6f   : > { %761 = vmatpush.bf16.msra.mxu2 %v1198_v17 }
  0x72   : > { %1083 = vmatmul.msk.f32.gmra.mxu0 %vm409_vm0, %v398_v16 }
  0x7a   : > { %1084 = vmatmul.msk.f32.gmra.mxu0 %vm409_vm0, %v399_v19  ;;  %v1197_v19 = vld [vmem:[%s1640_s5 + $0x8] sm:$0xff] }
  0x7b   : > { %762 = vmatpush.bf16.msra.mxu2 %v1197_v19  ;;  %v1206_v19 = vld [vmem:[%s1642_s7 + $0x10] sm:$0xff] }
  0x7f   : > { %763 = vmatpush.bf16.msra.mxu2 %v1196_v20 }
  0x82   : > { %1085 = vmatmul.msk.f32.gmra.mxu0 %vm409_vm0, %v400_v22 }
  0x8a   : > { %1086 = vmatmul.msk.f32.gmra.mxu0 %vm409_vm0, %v401_v24 }
  0x92   : > { %1087 = vmatmul.msk.f32.gmra.mxu0 %vm409_vm0, %v402_v25 }
  0x97   : > { %v475_v26 = vpop.f32.mrf.mxu0 }
  0x98   : > { %v476_v28 = vadd.f32 %v1501_v27, %v475_v26 }
  0x9a   : > { %v523_v31 = vmax.f32 %v476_v28, 0.0 }
  0x9f   : > { %v478_v29 = vpop.f32.mrf.mxu0 }
  0xa0   : > { %v479_v30 = vadd.f32 %v1501_v27, %v478_v29  ;;  %v1546_v29 = vld [vmem:[%s1639_s4] ss:$0 sm:$0xff] }
  0xa2   : > { %v524_v32 = vmax.f32 %v479_v30, 0.0 }
  0xa4   : > { %v540_v33 = vpack.c.bf16 %v524_v32, %v523_v31 }
  0xa6   : > { %623 = vmatmul.bf16.vlgmr.msra.gmra.mxu1 %v540_v33 }
  0xa7   : > { %v481_v34 = vpop.f32.mrf.mxu0 }
  0xa8   : > { %v482_v35 = vadd.f32 %v1501_v27, %v481_v34 }
  0xaa   : > { %v525_v38 = vmax.f32 %v482_v35, 0.0 }
  0xaf   : > { %v484_v36 = vpop.f32.mrf.mxu0 }
  0xb0   : > { %v485_v37 = vadd.f32 %v1501_v27, %v484_v36 }
  0xb2   : > { %v526_v39 = vmax.f32 %v485_v37, 0.0 }
  0xb4   : > { %v541_v40 = vpack.c.bf16 %v526_v39, %v525_v38 }
  0xb6   : > { %628 = vmatmul.bf16.gmra.mxu1 %v541_v40 }
  0xb7   : > { %v487_v41 = vpop.f32.mrf.mxu0 }
  0xb8   : > { %v488_v42 = vadd.f32 %v1501_v27, %v487_v41 }
  0xba   : > { %v527_v45 = vmax.f32 %v488_v42, 0.0 }
  0xbf   : > { %v490_v43 = vpop.f32.mrf.mxu0 }
  0xc0   : > { %v491_v44 = vadd.f32 %v1501_v27, %v490_v43 }
  0xc2   : > { %v528_v46 = vmax.f32 %v491_v44, 0.0 }
  0xc4   : > { %v542_v47 = vpack.c.bf16 %v528_v46, %v527_v45 }
  0xc6   : > { %633 = vmatmul.bf16.gmra.mxu1 %v542_v47 }
  0xc7   : > { %v493_v48 = vpop.f32.mrf.mxu0 }
  0xc8   : > { %v494_v49 = vadd.f32 %v1501_v27, %v493_v48 }
  0xca   : > { %v529_v52 = vmax.f32 %v494_v49, 0.0 }
  0xcf   : > { %v496_v50 = vpop.f32.mrf.mxu0 }
  0xd0   : > { %v497_v51 = vadd.f32 %v1501_v27, %v496_v50 }
  0xd2   : > { %v530_v53 = vmax.f32 %v497_v51, 0.0 }
  0xd4   : > { %v543_v54 = vpack.c.bf16 %v530_v53, %v529_v52 }
  0xd6   : > { %638 = vmatmul.bf16.gmra.mxu1 %v543_v54 }
  0xd7   : > { %v499_v55 = vpop.f32.mrf.mxu0 }
  0xd8   : > { %v500_v56 = vadd.f32 %v1501_v27, %v499_v55 }
  0xda   : > { %v531_v59 = vmax.f32 %v500_v56, 0.0 }
  0xdf   : > { %v502_v57 = vpop.f32.mrf.mxu0 }
  0xe0   : > { %v503_v58 = vadd.f32 %v1501_v27, %v502_v57 }
  0xe2   : > { %v532_v60 = vmax.f32 %v503_v58, 0.0 }
  0xe4   : > { %v544_v61 = vpack.c.bf16 %v532_v60, %v531_v59 }
  0xe6   : > { %643 = vmatmul.bf16.gmra.mxu1 %v544_v61 }
  0xe7   : > { %v505_v62 = vpop.f32.mrf.mxu0 }
  0xe8   : > { %v506_v63 = vadd.f32 %v1501_v27, %v505_v62 }
  0xea   : > { %v533_v3 = vmax.f32 %v506_v63, 0.0 }
  0xef   : > { %v508_v0 = vpop.f32.mrf.mxu0 }
  0xf0   : > { %v509_v1 = vadd.f32 %v1501_v27, %v508_v0 }
  0xf2   : > { %v534_v4 = vmax.f32 %v509_v1, 0.0 }
  0xf4   : > { %v545_v5 = vpack.c.bf16 %v534_v4, %v533_v3 }
  0xf6   : > { %648 = vmatmul.bf16.gmra.mxu1 %v545_v5 }
  0xf7   : > { %v511_v7 = vpop.f32.mrf.mxu0 }
  0xf8   : > { %v512_v10 = vadd.f32 %v1501_v27, %v511_v7 }
  0xfa   : > { %v535_v14 = vmax.f32 %v512_v10, 0.0 }
  0xff   : > { %v514_v11 = vpop.f32.mrf.mxu0 }
 0x100   : > { %v515_v12 = vadd.f32 %v1501_v27, %v514_v11 }
 0x102   : > { %v536_v15 = vmax.f32 %v515_v12, 0.0 }
 0x104   : > { %v546_v16 = vpack.c.bf16 %v536_v15, %v535_v14 }
 0x106   : > { %653 = vmatmul.bf16.gmra.mxu1 %v546_v16 }
 0x107   : > { %v517_v18 = vpop.f32.mrf.mxu0 }
 0x108   : > { %v518_v21 = vadd.f32 %v1501_v27, %v517_v18  ;;  %v1207_v18 = vld [vmem:[%s1642_s7 + $0x18] sm:$0xff] }
 0x109   : > { %901 = vmatpush.bf16.msra.mxu3 %v1207_v18 }
 0x10a   : > { %v537_v24 = vmax.f32 %v518_v21, 0.0 }
 0x10d   : > { %902 = vmatpush.bf16.msra.mxu3 %v1206_v19 }
 0x10f   : > { %v520_v22 = vpop.f32.mrf.mxu0 }
 0x110   : > { %v521_v23 = vadd.f32 %v1501_v27, %v520_v22  ;;  %v1205_v22 = vld [vmem:[%s1642_s7 + $0x8] sm:$0xff] }
 0x111   : > { %903 = vmatpush.bf16.msra.mxu3 %v1205_v22 }
 0x112   : > { %v538_v25 = vmax.f32 %v521_v23, 0.0 }
 0x114   : > { %v547_v26 = vpack.c.bf16 %v538_v25, %v537_v24 }
 0x116   : > { %658 = vmatmul.bf16.gmra.mxu1 %v547_v26  ;;  %v1204_v26 = vld [vmem:[%s1642_s7] sm:$0xff] }
 0x117   : > { %904 = vmatpush.bf16.msra.mxu3 %v1204_v26 }
 0x123   : > { %v624_v28 = vpop.f32.mrf.mxu1 }
 0x124   : > { %v625_v30 = vadd.f32 %v1546_v29, %v624_v28 }
 0x126   : > { %v664_v33 = vmax.f32 %v625_v30, 0.0 }
 0x12b   : > { %v626_v31 = vpop.f32.mrf.mxu1 }
 0x12c   : > { %v627_v32 = vadd.f32 %v1546_v29, %v626_v31  ;;  %v1255_v31 = vld [vmem:[%s1641_s6] ss:$0 sm:$0xff] }
 0x12e   : > { %v665_v34 = vmax.f32 %v627_v32, 0.0 }
 0x130   : > { %v681_v35 = vpack.c.bf16 %v665_v34, %v664_v33 }
 0x132   : > { %764 = vmatmul.bf16.vlgmr.msra.gmra.mxu2 %v681_v35 }
 0x133   : > { %v629_v27 = vpop.f32.mrf.mxu1 }
 0x134   : > { %v630_v36 = vadd.f32 %v1546_v29, %v629_v27 }
 0x136   : > { %v666_v39 = vmax.f32 %v630_v36, 0.0 }
 0x13b   : > { %v631_v37 = vpop.f32.mrf.mxu1 }
 0x13c   : > { %v632_v38 = vadd.f32 %v1546_v29, %v631_v37 }
 0x13e   : > { %v667_v40 = vmax.f32 %v632_v38, 0.0 }
 0x140   : > { %v682_v41 = vpack.c.bf16 %v667_v40, %v666_v39 }
 0x142   : > { %769 = vmatmul.bf16.gmra.mxu2 %v682_v41 }
 0x143   : > { %v634_v42 = vpop.f32.mrf.mxu1 }
 0x144   : > { %v635_v43 = vadd.f32 %v1546_v29, %v634_v42 }
 0x146   : > { %v668_v46 = vmax.f32 %v635_v43, 0.0 }
 0x14b   : > { %v636_v44 = vpop.f32.mrf.mxu1 }
 0x14c   : > { %v637_v45 = vadd.f32 %v1546_v29, %v636_v44 }
 0x14e   : > { %v669_v47 = vmax.f32 %v637_v45, 0.0 }
 0x150   : > { %v683_v48 = vpack.c.bf16 %v669_v47, %v668_v46 }
 0x152   : > { %774 = vmatmul.bf16.gmra.mxu2 %v683_v48 }
 0x153   : > { %v639_v49 = vpop.f32.mrf.mxu1 }
 0x154   : > { %v640_v50 = vadd.f32 %v1546_v29, %v639_v49 }
 0x156   : > { %v670_v53 = vmax.f32 %v640_v50, 0.0 }
 0x15b   : > { %v641_v51 = vpop.f32.mrf.mxu1 }
 0x15c   : > { %v642_v52 = vadd.f32 %v1546_v29, %v641_v51 }
 0x15e   : > { %v671_v54 = vmax.f32 %v642_v52, 0.0 }
 0x160   : > { %v684_v55 = vpack.c.bf16 %v671_v54, %v670_v53 }
 0x162   : > { %779 = vmatmul.bf16.gmra.mxu2 %v684_v55 }
 0x163   : > { %v644_v56 = vpop.f32.mrf.mxu1 }
 0x164   : > { %v645_v57 = vadd.f32 %v1546_v29, %v644_v56 }
 0x166   : > { %v672_v60 = vmax.f32 %v645_v57, 0.0 }
 0x16b   : > { %v646_v58 = vpop.f32.mrf.mxu1 }
 0x16c   : > { %v647_v59 = vadd.f32 %v1546_v29, %v646_v58 }
 0x16e   : > { %v673_v61 = vmax.f32 %v647_v59, 0.0 }
 0x170   : > { %v685_v62 = vpack.c.bf16 %v673_v61, %v672_v60 }
 0x172   : > { %784 = vmatmul.bf16.gmra.mxu2 %v685_v62 }
 0x173   : > { %v649_v63 = vpop.f32.mrf.mxu1 }
 0x174   : > { %v650_v0 = vadd.f32 %v1546_v29, %v649_v63 }
 0x176   : > { %v674_v3 = vmax.f32 %v650_v0, 0.0 }
 0x17b   : > { %v651_v1 = vpop.f32.mrf.mxu1 }
 0x17c   : > { %v652_v2 = vadd.f32 %v1546_v29, %v651_v1 }
 0x17e   : > { %v675_v4 = vmax.f32 %v652_v2, 0.0 }
 0x180   : > { %v686_v5 = vpack.c.bf16 %v675_v4, %v674_v3 }
 0x182   : > { %789 = vmatmul.bf16.gmra.mxu2 %v686_v5 }
 0x183   : > { %v654_v7 = vpop.f32.mrf.mxu1 }
 0x184   : > { %v655_v10 = vadd.f32 %v1546_v29, %v654_v7 }
 0x186   : > { %v676_v14 = vmax.f32 %v655_v10, 0.0 }
 0x18b   : > { %v656_v11 = vpop.f32.mrf.mxu1 }
 0x18c   : > { %v657_v12 = vadd.f32 %v1546_v29, %v656_v11 }
 0x18e   : > { %v677_v15 = vmax.f32 %v657_v12, 0.0 }
 0x190   : > { %v687_v16 = vpack.c.bf16 %v677_v15, %v676_v14 }
 0x192   : > { %794 = vmatmul.bf16.gmra.mxu2 %v687_v16 }
 0x193   : > { %v659_v17 = vpop.f32.mrf.mxu1 }
 0x194   : > { %v660_v20 = vadd.f32 %v1546_v29, %v659_v17 }
 0x196   : > { %v678_v24 = vmax.f32 %v660_v20, 0.0 }
 0x19b   : > { %v661_v21 = vpop.f32.mrf.mxu1 }
 0x19c   : > { %v662_v23 = vadd.f32 %v1546_v29, %v661_v21 }
 0x19e   : > { %v679_v25 = vmax.f32 %v662_v23, 0.0 }
 0x1a0   : > { %v688_v28 = vpack.c.bf16 %v679_v25, %v678_v24 }
 0x1a2   : > { %799 = vmatmul.bf16.gmra.mxu2 %v688_v28 }
 0x1b5   : > { %v765_v30 = vpop.f32.mrf.mxu2 }
 0x1b6   : > { %v766_v32 = vadd.f32 %v1255_v31, %v765_v30 }
 0x1b8   : > { %v805_v35 = vmax.f32 %v766_v32, 0.0 }
 0x1bd   : > { %v767_v33 = vpop.f32.mrf.mxu2 }
 0x1be   : > { %v768_v34 = vadd.f32 %v1255_v31, %v767_v33 }
 0x1c0   : > { %v806_v29 = vmax.f32 %v768_v34, 0.0 }
 0x1c2   : > { %v822_v27 = vpack.c.bf16 %v806_v29, %v805_v35 }
 0x1c4   : > { %905 = vmatmul.bf16.vlgmr.msra.gmra.mxu3 %v822_v27 }
 0x1c5   : > { %v770_v36 = vpop.f32.mrf.mxu2 }
 0x1c6   : > { %v771_v37 = vadd.f32 %v1255_v31, %v770_v36  ;;  %v1256_v36 = vld [vmem:[%s1643_s8] ss:$0 sm:$0xff] }
 0x1c8   : > { %v807_v40 = vmax.f32 %v771_v37, 0.0 }
 0x1cd   : > { %v772_v38 = vpop.f32.mrf.mxu2 }
 0x1ce   : > { %v773_v39 = vadd.f32 %v1255_v31, %v772_v38 }
 0x1d0   : > { %v808_v41 = vmax.f32 %v773_v39, 0.0 }
 0x1d2   : > { %v823_v42 = vpack.c.bf16 %v808_v41, %v807_v40 }
 0x1d4   : > { %910 = vmatmul.bf16.gmra.mxu3 %v823_v42 }
 0x1d5   : > { %v775_v43 = vpop.f32.mrf.mxu2 }
 0x1d6   : > { %v776_v44 = vadd.f32 %v1255_v31, %v775_v43 }
 0x1d8   : > { %v809_v47 = vmax.f32 %v776_v44, 0.0 }
 0x1dd   : > { %v777_v45 = vpop.f32.mrf.mxu2 }
 0x1de   : > { %v778_v46 = vadd.f32 %v1255_v31, %v777_v45 }
 0x1e0   : > { %v810_v48 = vmax.f32 %v778_v46, 0.0 }
 0x1e2   : > { %v824_v49 = vpack.c.bf16 %v810_v48, %v809_v47 }
 0x1e4   : > { %915 = vmatmul.bf16.gmra.mxu3 %v824_v49 }
 0x1e5   : > { %v780_v50 = vpop.f32.mrf.mxu2 }
 0x1e6   : > { %v781_v51 = vadd.f32 %v1255_v31, %v780_v50 }
 0x1e8   : > { %v811_v54 = vmax.f32 %v781_v51, 0.0 }
 0x1ed   : > { %v782_v52 = vpop.f32.mrf.mxu2 }
 0x1ee   : > { %v783_v53 = vadd.f32 %v1255_v31, %v782_v52 }
 0x1f0   : > { %v812_v55 = vmax.f32 %v783_v53, 0.0 }
 0x1f2   : > { %v825_v56 = vpack.c.bf16 %v812_v55, %v811_v54 }
 0x1f4   : > { %920 = vmatmul.bf16.gmra.mxu3 %v825_v56 }
 0x1f5   : > { %v785_v57 = vpop.f32.mrf.mxu2 }
 0x1f6   : > { %v786_v58 = vadd.f32 %v1255_v31, %v785_v57  ;;  %v963_v57 = vld [vmem:[%s1645_s10] sm:$0xff] }
 0x1f8   : > { %v813_v61 = vmax.f32 %v786_v58, 0.0  ;;  %v1321_v58 = vmov 0  }
 0x1f9   : > { %1252 = vset.pattern.permute.xlu0 %v1321_v58 }
 0x1fa   : > { %966 = vperm.xlu0 %1252, %v963_v57  }
 0x1fd   : > { %v787_v59 = vpop.f32.mrf.mxu2 }
 0x1fe   : > { %v788_v60 = vadd.f32 %v1255_v31, %v787_v59 }
 0x200   : > { %v814_v62 = vmax.f32 %v788_v60, 0.0 }
 0x202   : > { %v826_v63 = vpack.c.bf16 %v814_v62, %v813_v61 }
 0x204   : > { %925 = vmatmul.bf16.gmra.mxu3 %v826_v63 }
 0x205   : > { %v790_v0 = vpop.f32.mrf.mxu2 }
 0x206   : > { %v791_v1 = vadd.f32 %v1255_v31, %v790_v0 }
 0x208   : > { %v815_v4 = vmax.f32 %v791_v1, 0.0 }
 0x20d   : > { %v792_v2 = vpop.f32.mrf.mxu2 }
 0x20e   : > { %v793_v3 = vadd.f32 %v1255_v31, %v792_v2 }
 0x210   : > { %v816_v5 = vmax.f32 %v793_v3, 0.0 }
 0x212   : > { %v827_v6 = vpack.c.bf16 %v816_v5, %v815_v4 }
 0x214   : > { %930 = vmatmul.bf16.gmra.mxu3 %v827_v6 }
 0x215   : > { %v795_v7 = vpop.f32.mrf.mxu2 }
 0x216   : > { %v796_v8 = vadd.f32 %v1255_v31, %v795_v7 }
 0x218   : > { %v817_v11 = vmax.f32 %v796_v8, 0.0  ;;  %v962_v8 = vld [vmem:[%s1644_s9] sm:$0xff] }
 0x21d   : > { %v797_v9 = vpop.f32.mrf.mxu2 }
 0x21e   : > { %v798_v10 = vadd.f32 %v1255_v31, %v797_v9 }
 0x220   : > { %v818_v12 = vmax.f32 %v798_v10, 0.0 }
 0x222   : > { %v828_v13 = vpack.c.bf16 %v818_v12, %v817_v11 }
 0x224   : > { %935 = vmatmul.bf16.gmra.mxu3 %v828_v13 }
 0x225   : > { %v800_v14 = vpop.f32.mrf.mxu2 }
 0x226   : > { %v801_v15 = vadd.f32 %v1255_v31, %v800_v14 }
 0x228   : > { %v819_v18 = vmax.f32 %v801_v15, 0.0 }
 0x22d   : > { %v802_v16 = vpop.f32.mrf.mxu2 }
 0x22e   : > { %v803_v17 = vadd.f32 %v1255_v31, %v802_v16 }
 0x230   : > { %v820_v19 = vmax.f32 %v803_v17, 0.0 }
 0x232   : > { %v829_v20 = vpack.c.bf16 %v820_v19, %v819_v18 }
 0x234   : > { %940 = vmatmul.bf16.gmra.mxu3 %v829_v20 }
 0x247   : > { %v1591_v21 = vpop.f32.mrf.mxu3 }
 0x248   : > { %v907_v5 = vadd.f32 %v1256_v36, %v1591_v21 }
 0x24a   : > { %v946_v7 = vmax.f32 %v907_v5, 0.0 }
 0x24f   : > { %v908_v22 = vpop.f32.mrf.mxu3 }
 0x250   : > { %v909_v3 = vadd.f32 %v1256_v36, %v908_v22 }
 0x252   : > { %v947_v6 = vmax.f32 %v909_v3, 0.0 }
 0x257   : > { %v911_v23 = vpop.f32.mrf.mxu3 }
 0x258   : > { %v912_v1 = vadd.f32 %v1256_v36, %v911_v23 }
 0x25a   : > { %v948_v4 = vmax.f32 %v912_v1, 0.0 }
 0x25f   : > { %v913_v24 = vpop.f32.mrf.mxu3 }
 0x260   : > { %v914_v63 = vadd.f32 %v1256_v36, %v913_v24 }
 0x262   : > { %v949_v2 = vmax.f32 %v914_v63, 0.0 }
 0x267   : > { %v916_v25 = vpop.f32.mrf.mxu3 }
 0x268   : > { %v917_v61 = vadd.f32 %v1256_v36, %v916_v25 }
 0x26a   : > { %v950_v0 = vmax.f32 %v917_v61, 0.0 }
 0x26c   : > { %v967_v9 = vpop.permute.xlu0 %966 }
 0x26f   : > { %v918_v26 = vpop.f32.mrf.mxu3 }
 0x270   : > { %v919_v59 = vadd.f32 %v1256_v36, %v918_v26 }
 0x272   : > { %v951_v62 = vmax.f32 %v919_v59, 0.0 }
 0x277   : > { %v921_v28 = vpop.f32.mrf.mxu3 }
 0x278   : > { %v922_v55 = vadd.f32 %v1256_v36, %v921_v28 }
 0x27a   : > { %v952_v60 = vmax.f32 %v922_v55, 0.0 }
 0x27f   : > { %v923_v30 = vpop.f32.mrf.mxu3 }
 0x280   : > { %v924_v53 = vadd.f32 %v1256_v36, %v923_v30 }
 0x282   : > { %v953_v56 = vmax.f32 %v924_v53, 0.0 }
 0x287   : > { %v926_v32 = vpop.f32.mrf.mxu3 }
 0x288   : > { %v927_v51 = vadd.f32 %v1256_v36, %v926_v32 }
 0x28a   : > { %v954_v54 = vmax.f32 %v927_v51, 0.0 }
 0x28f   : > { %v928_v33 = vpop.f32.mrf.mxu3 }
 0x290   : > { %v929_v49 = vadd.f32 %v1256_v36, %v928_v33 }
 0x292   : > { %v955_v52 = vmax.f32 %v929_v49, 0.0 }
 0x297   : > { %v931_v34 = vpop.f32.mrf.mxu3 }
 0x298   : > { %v932_v47 = vadd.f32 %v1256_v36, %v931_v34 }
 0x29a   : > { %v956_v50 = vmax.f32 %v932_v47, 0.0 }
 0x29f   : > { %v933_v35 = vpop.f32.mrf.mxu3 }
 0x2a0   : > { %v934_v45 = vadd.f32 %v1256_v36, %v933_v35 }
 0x2a2   : > { %v957_v48 = vmax.f32 %v934_v45, 0.0 }
 0x2a7   : > { %v936_v29 = vpop.f32.mrf.mxu3 }
 0x2a8   : > { %v937_v43 = vadd.f32 %v1256_v36, %v936_v29 }
 0x2aa   : > { %v958_v46 = vmax.f32 %v937_v43, 0.0 }
 0x2af   : > { %v938_v27 = vpop.f32.mrf.mxu3 }
 0x2b0   : > { %v939_v41 = vadd.f32 %v1256_v36, %v938_v27 }
 0x2b2   : > { %v959_v44 = vmax.f32 %v939_v41, 0.0 }
 0x2b7   : > { %v941_v31 = vpop.f32.mrf.mxu3 }
 0x2b8   : > { %v942_v39 = vadd.f32 %v1256_v36, %v941_v31 }
 0x2ba   : > { %v960_v42 = vmax.f32 %v942_v39, 0.0 }
 0x2bf   : > { %v943_v37 = vpop.f32.mrf.mxu3 }
 0x2c0   : > { %v944_v38 = vadd.f32 %v1256_v36, %v943_v37 }
 0x2c2   : > { %v961_v40 = vmax.f32 %v944_v38, 0.0 }
 0x2c4   : > { %969 = vmatpush.xpose.msrb.mxu0 %v961_v40 }
 0x2c8   : > { %970 = vmatpush.xpose.msrb.mxu0 %v960_v42 }
 0x2cc   : > { %971 = vmatpush.xpose.msrb.mxu0 %v959_v44 }
 0x2d0   : > { %972 = vmatpush.xpose.msrb.mxu0 %v958_v46 }
 0x2d4   : > { %973 = vmatpush.xpose.msrb.mxu0 %v957_v48 }
 0x2d8   : > { %974 = vmatpush.xpose.msrb.mxu0 %v956_v50 }
 0x2dc   : > { %975 = vmatpush.xpose.msrb.mxu0 %v955_v52 }
 0x2e0   : > { %976 = vmatpush.xpose.msrb.mxu0 %v954_v54 }
 0x2e4   : > { %977 = vmatpush.xpose.msrb.mxu0 %v953_v56 }
 0x2e8   : > { %978 = vmatpush.xpose.msrb.mxu0 %v952_v60 }
 0x2ec   : > { %979 = vmatpush.xpose.msrb.mxu0 %v951_v62 }
 0x2f0   : > { %980 = vmatpush.xpose.msrb.mxu0 %v950_v0 }
 0x2f4   : > { %981 = vmatpush.xpose.msrb.mxu0 %v949_v2 }
 0x2f8   : > { %982 = vmatpush.xpose.msrb.mxu0 %v948_v4 }
 0x2fc   : > { %983 = vmatpush.xpose.msrb.mxu0 %v947_v6 }
 0x300   : > { %984 = vmatpush.xpose.msrb.mxu0 %v946_v7 }
 0x303   : > { %985 = vmatmul.f32.vlgmr.msrb.gmra.mxu0 %v962_v8 }
 0x380   : > { %v986_v10 = vpop.f32.mrf.mxu0 }
 0x381   : > { %v987_v11 = vadd.f32 %v986_v10, %v967_v9 }
 0x383   : > { %989 = vst [vmem:[%s380_s16] sm:$0xff] %v987_v11 }
 0x384   : > { %1284 = shalt.err (!%p1281_p3)
}
 0x385   : > { %1212 = dma.vmem_to_hbm [thread:$0]  (%p1420_p5), %s1004_s22, 128, %s1006_s0, %s991_s24  }
 0x386 PF: > { %p1218_p4 = scmp.ge.s32.totalorder %s1319_s20, 2  ;;  %s1017_s29 = sand.u32 1, %s1307_s17  }
 0x387   : > { %s1018_s15 = scalar_lea.sflag [#allocation3], %s1017_s29 }
 0x388   : > { %p1215_p7 = pnand %p1218_p4, %p1424_p6 }
 0x38a   : > { %p1216_p8 = pneg %p1215_p7 }
 0x38c   : > { %1302 = dma.done.wait (%p1216_p8), %s1018_s15, 128  }
 0x38d   : > { %1304 = vsyncadd (%p1216_p8), %s1018_s15, 4294967168  ;;  %p21_p9 = scmp.ge.s32.totalorder %s1407_s23, 4   ;;  %s1653_s17 = smov %s1311_s18 }
 0x38e   : > { %s1654_s18 = smov %s1315_s19  ;;  %s1655_s19 = smov %s1418_s26 }
 0x38f   : > { %s1656_s20 = smov %s1407_s23  ;;  %23 = sbr.rel (!%p21_p9) target bundleno = 6 (0x6), region = 99 }
 0x394   :  { %1024 = vsyncpa [#allocation3], 1 }
 0x395   :  { %1026 = vsyncpa [#allocation3 + $0x1], 1 }

</bundles_post_ra>
